<compile_context>
chip_gen: v6e
topology: v6e:2x2x1
jax: 0.10.0
libtpu: 0.0.40
codegen_flags: <defaults>
</compile_context>

<pallas_src>
import functools

import jax
import jax.numpy as jnp
from jax.experimental import pallas as pl
from jax.experimental.pallas import tpu as pltpu

BN_EPS = 1e-5
LANE = 128          # TPU lane width (vreg minor dim)
STAT_ROWS = 8       # f32 sublane tile (partial-stats block height)
ROW_ALIGN = 16      # bf16 packs 2 rows per sublane -> align M tiles to 16
MAX_TILE_M = 512    # ~85% of HBM roofline measured at 512-wide tiles
FUSED_MAX_M = 512   # single-tile fused fast path threshold


def _round_up(x, m):
    return (x + m - 1) // m * m


def _cdiv(a, b):
    return (a + b - 1) // b


def _default_vmem_cap():
    """Per-chip VMEM cap (~65% of physical); safe fallback for v7x (64 MiB)."""
    try:
        info = pltpu.get_tpu_info()
        phys = int(getattr(info, "vmem_capacity_bytes", 0) or 0)
        if phys > 0:
            return int(phys * 0.65)
    except Exception:
        pass
    return 48 << 20


_VMEM_CAP = _default_vmem_cap()


def _vmem_limit(*buffer_bytes):
    """Double-buffered estimate (inputs AND outputs) + headroom, per-chip cap."""
    need = 2 * sum(buffer_bytes)
    need = int(need * 1.25) + (2 << 20)
    return max(8 << 20, min(need, _VMEM_CAP))


def _tiling(m):
    """Return (tile_m, num_tiles, m_pad) for the M (rows) axis."""
    if m <= FUSED_MAX_M:
        # Single tile -> fused fast path.  (On v7x one TensorCore is idle for
        # these layers, but at this size dispatch + HBM round-trip overhead of
        # the split two-pass path outweighs the second core.)
        tile_m = _round_up(max(m, ROW_ALIGN), ROW_ALIGN)
        return tile_m, 1, tile_m
    num_tiles = _cdiv(m, MAX_TILE_M)
    tile_m = _round_up(_cdiv(m, num_tiles), ROW_ALIGN)   # balanced tiles
    return tile_m, num_tiles, tile_m * num_tiles


# ---------------------------------------------------------------------------
# Pallas kernels
# ---------------------------------------------------------------------------
def _fused_conv_bn_relu_kernel(p_ref, w_ref, gamma_ref, beta_ref, o_ref, *,
                               m_rows):
    """Single-tile fast path: matmul + batch stats + BN(train) + ReLU."""
    # Conv-as-matmul: bf16 x bf16 MXU inputs, f32 accumulation.
    y = jnp.dot(p_ref[...], w_ref[...], preferred_element_type=jnp.float32)
    inv_m = 1.0 / float(m_rows)
    # Zero-padded rows contribute exactly 0 to the sum.
    mean = jnp.sum(y, axis=0, keepdims=True) * inv_m
    if m_rows < y.shape[0]:
        rows = jax.lax.broadcasted_iota(jnp.int32, y.shape, 0)
        centered = jnp.where(rows < m_rows, y - mean, 0.0)
    else:
        centered = y - mean
    var = jnp.sum(centered * centered, axis=0, keepdims=True) * inv_m
    inv_std = jax.lax.rsqrt(var + BN_EPS)
    scale = gamma_ref[...] * inv_std            # padded channels: gamma=0 -> 0
    shift = beta_ref[...] - mean * scale        # padded channels -> 0
    o_ref[...] = jnp.maximum(y * scale + shift, 0.0).astype(o_ref.dtype)


def _conv_stats_kernel(p_ref, w_ref, y_ref, stats_ref):
    """Multi-tile pass 1: matmul + per-tile partial BN stats, bf16 y store."""
    y = jnp.dot(p_ref[...], w_ref[...], preferred_element_type=jnp.float32)
    y_ref[...] = y.astype(y_ref.dtype)          # bf16 intermediate (less HBM)
    s = jnp.sum(y, axis=0, keepdims=True)
    sq = jnp.sum(y * y, axis=0, keepdims=True)
    pad = jnp.zeros((STAT_ROWS - 2, y.shape[1]), jnp.float32)
    stats_ref[...] = jnp.concatenate([s, sq, pad], axis=0)


def _bn_relu_kernel(y_ref, scale_ref, shift_ref, o_ref):
    """Multi-tile pass 2: folded BN + ReLU; f32 math, bf16 store."""
    y = y_ref[...].astype(jnp.float32)
    o_ref[...] = jnp.maximum(y * scale_ref[...] + shift_ref[...],
                             0.0).astype(o_ref.dtype)


def _matmul_kernel(p_ref, w_ref, o_ref):
    o_ref[...] = jnp.dot(p_ref[...], w_ref[...],
                         preferred_element_type=jnp.float32)


# ---------------------------------------------------------------------------
# pallas_call wrappers
# ---------------------------------------------------------------------------
def _pad_patches(patches, k_pad, m_pad):
    m, k = patches.shape
    if m_pad == m and k_pad == k and patches.dtype == jnp.bfloat16:
        return patches
    return jnp.pad(patches, ((0, m_pad - m), (0, k_pad - k))).astype(jnp.bfloat16)


def conv_bn_relu_layer(patches, w2d, gamma_pad, beta_pad):
    """One Conv2d(bias=False) + BatchNorm2d(train) + ReLU layer.

    patches:   (M, K) im2col activations (bf16 or f32).
    w2d:       (K_pad, C_pad) bf16 prepared weights (zero-padded rows/cols).
    gamma_pad / beta_pad: (1, C_pad) f32, zero in padded channels.
    Returns (M, C_pad) bf16; padded channels are exactly 0.
    """
    m, _ = patches.shape
    k_pad, c_pad = w2d.shape
    tile_m, num_tiles, m_pad = _tiling(m)
    p = _pad_patches(patches, k_pad, m_pad)

    if num_tiles == 1:
        # --- Fused fast path: one dispatch, no pre-BN HBM round trip. ---
        out = pl.pallas_call(
            functools.partial(_fused_conv_bn_relu_kernel, m_rows=m),
            out_shape=jax.ShapeDtypeStruct((m_pad, c_pad), jnp.bfloat16),
            grid=(1,),
            in_specs=[
                pl.BlockSpec((m_pad, k_pad), lambda i: (0, 0)),
                pl.BlockSpec((k_pad, c_pad), lambda i: (0, 0)),
                pl.BlockSpec((1, c_pad), lambda i: (0, 0)),
                pl.BlockSpec((1, c_pad), lambda i: (0, 0)),
            ],
            out_specs=pl.BlockSpec((m_pad, c_pad), lambda i: (0, 0)),
            compiler_params=pltpu.CompilerParams(
                dimension_semantics=("arbitrary",),
                vmem_limit_bytes=_vmem_limit(
                    m_pad * k_pad * 2, k_pad * c_pad * 2,
                    m_pad * c_pad * 4,          # f32 y held in VMEM
                    m_pad * c_pad * 2, 2 * c_pad * 4),
            ),
        )(p, w2d, gamma_pad, beta_pad)
        return out[:m]

    # --- Multi-tile path: pass 1 = matmul + per-tile partial stats. ---
    y, stats = pl.pallas_call(
        _conv_stats_kernel,
        out_shape=(
            jax.ShapeDtypeStruct((m_pad, c_pad), jnp.bfloat16),
            jax.ShapeDtypeStruct((num_tiles, STAT_ROWS, c_pad), jnp.float32),
        ),
        grid=(num_tiles,),
        in_specs=[
            pl.BlockSpec((tile_m, k_pad), lambda i: (i, 0)),
            pl.BlockSpec((k_pad, c_pad), lambda i: (0, 0)),
        ],
        out_specs=(
            pl.BlockSpec((tile_m, c_pad), lambda i: (i, 0)),
            pl.BlockSpec((None, STAT_ROWS, c_pad), lambda i: (i, 0, 0)),
        ),
        compiler_params=pltpu.CompilerParams(
            dimension_semantics=("parallel",),
            vmem_limit_bytes=_vmem_limit(
                tile_m * k_pad * 2, k_pad * c_pad * 2,
                tile_m * c_pad * 2, STAT_ROWS * c_pad * 4),
        ),
    )(p, w2d)

    # Per-channel reduction of partial stats + BN affine folding (tiny glue,
    # fused by XLA into the same jit).  Biased variance, training-mode BN.
    m_real = jnp.float32(m)
    s = jnp.sum(stats[:, 0, :], axis=0)
    sq = jnp.sum(stats[:, 1, :], axis=0)
    mean = s / m_real
    # TODO(synk): E[y^2]-E[y]^2 can cancel catastrophically when |mean|>>std;
    # switch to shifted / Welford partials if tight PyTorch-BN parity matters.
    var = jnp.maximum(sq / m_real - mean * mean, 0.0)
    inv_std = jax.lax.rsqrt(var + BN_EPS)
    scale = gamma_pad * inv_std            # (1, c_pad); padded channels -> 0
    shift = beta_pad - mean * scale        # (1, c_pad)

    # Pass 2: normalize + ReLU; lane-dense bf16 loads/stores.
    out = pl.pallas_call(
        _bn_relu_kernel,
        out_shape=jax.ShapeDtypeStruct((m_pad, c_pad), jnp.bfloat16),
        grid=(num_tiles,),
        in_specs=[
            pl.BlockSpec((tile_m, c_pad), lambda i: (i, 0)),
            pl.BlockSpec((1, c_pad), lambda i: (0, 0)),
            pl.BlockSpec((1, c_pad), lambda i: (0, 0)),
        ],
        out_specs=pl.BlockSpec((tile_m, c_pad), lambda i: (i, 0)),
        compiler_params=pltpu.CompilerParams(
            dimension_semantics=("parallel",),
            vmem_limit_bytes=_vmem_limit(
                tile_m * c_pad * 2, tile_m * c_pad * 2,
                c_pad * 4, c_pad * 4),
        ),
    )(y, scale, shift)
    return out[:m]


def matmul_layer(patches, w2d):
    """Final 'FC' conv (bias=False): plain tiled matmul, f32 output."""
    m, _ = patches.shape
    k_pad, n_pad = w2d.shape
    tile_m, num_tiles, m_pad = _tiling(m)
    p = _pad_patches(patches, k_pad, m_pad)

    out = pl.pallas_call(
        _matmul_kernel,
        out_shape=jax.ShapeDtypeStruct((m_pad, n_pad), jnp.float32),
        grid=(num_tiles,),
        in_specs=[
            pl.BlockSpec((tile_m, k_pad), lambda i: (i, 0)),
            pl.BlockSpec((k_pad, n_pad), lambda i: (0, 0)),
        ],
        out_specs=pl.BlockSpec((tile_m, n_pad), lambda i: (i, 0)),
        compiler_params=pltpu.CompilerParams(
            dimension_semantics=("parallel",),
            vmem_limit_bytes=_vmem_limit(
                tile_m * k_pad * 2, k_pad * n_pad * 2, tile_m * n_pad * 4),
        ),
    )(p, w2d)
    return out[:m]


# ---------------------------------------------------------------------------
# Glue: im2col (plain JAX, fused inside the jit) + one-time parameter prep
# ---------------------------------------------------------------------------
def im2col(x_nhwc, kh, kw, stride, pad):
    """Extract conv patches -> (N*Ho*Wo, kh*kw*Cin)."""
    x = jnp.pad(x_nhwc, ((0, 0), (pad, pad), (pad, pad), (0, 0)))
    N, H, W, C = x.shape
    Ho = (H - kh) // stride + 1
    Wo = (W - kw) // stride + 1
    pieces = []
    for i in range(kh):
        for j in range(kw):
            pieces.append(x[:, i:i + Ho * stride:stride,
                            j:j + Wo * stride:stride, :])
    p = jnp.stack(pieces, axis=3)                 # (N, Ho, Wo, kh*kw, C)
    return p.reshape(N * Ho * Wo, kh * kw * C), (N, Ho, Wo)


def weight_to_2d(w_oihw):
    """PyTorch (Cout, Cin, kh, kw) -> (kh*kw*Cin, Cout), matching im2col."""
    Cout = w_oihw.shape[0]
    return jnp.transpose(w_oihw, (2, 3, 1, 0)).reshape(-1, Cout)


def prepare_params(conv_ws, gammas, betas, fc_w):
    """One-time prep: pad Cin to previous layer's c_pad (channels are carried
    lane-padded between layers), pad K / Cout / nOut to multiples of 128, and
    cast weights to bf16."""
    conv_prepared = []
    cin_pad_prev = None     # layer 0 input keeps its real nIn channels
    for li, (w, g, b) in enumerate(zip(conv_ws, gammas, betas)):
        cout = int(w.shape[0])
        cin = int(w.shape[1])
        c_pad = _round_up(cout, LANE)
        w = w.astype(jnp.float32)
        if li > 0:
            # Input activations carry cin_pad_prev channels (zeros in pad);
            # zero-pad the weight's Cin to match -> no extra contribution.
            w = jnp.pad(w, ((0, 0), (0, cin_pad_prev - cin), (0, 0), (0, 0)))
        w2d = weight_to_2d(w)
        k = w2d.shape[0]
        k_pad = _round_up(k, LANE)
        w2d = jnp.pad(w2d, ((0, k_pad - k), (0, c_pad - cout))).astype(jnp.bfloat16)
        g_pad = jnp.pad(g.astype(jnp.float32).reshape(1, -1),
                        ((0, 0), (0, c_pad - cout)))   # pad gamma = 0 -> scale 0
        b_pad = jnp.pad(b.astype(jnp.float32).reshape(1, -1),
                        ((0, 0), (0, c_pad - cout)))
        conv_prepared.append((w2d, g_pad, b_pad, c_pad))
        cin_pad_prev = c_pad

    n_out = int(fc_w.shape[0])
    cin = int(fc_w.shape[1])
    fcw = jnp.pad(fc_w.astype(jnp.float32),
                  ((0, 0), (0, cin_pad_prev - cin), (0, 0), (0, 0)))
    fc2d = weight_to_2d(fcw)
    k = fc2d.shape[0]
    k_pad = _round_up(k, LANE)
    n_pad = _round_up(n_out, LANE)
    fc2d = jnp.pad(fc2d, ((0, k_pad - k), (0, n_pad - n_out))).astype(jnp.bfloat16)
    return conv_prepared, fc2d, n_out


def dc_encoder_forward(x_nchw, prepared):
    """Forward pass of _dcEncoder. Input/output in PyTorch NCHW convention."""
    conv_prepared, fc2d, n_out = prepared
    # NCHW -> NHWC; bf16 so the 16x-expanded patches matrix is half the bytes.
    h = jnp.transpose(x_nchw, (0, 2, 3, 1)).astype(jnp.bfloat16)
    for w2d, g_pad, b_pad, c_pad in conv_prepared:
        patches, (N, Ho, Wo) = im2col(h, 4, 4, stride=2, pad=1)
        y = conv_bn_relu_layer(patches, w2d, g_pad, b_pad)   # (M, c_pad) bf16
        h = y.reshape(N, Ho, Wo, c_pad)                      # carry pad channels
    # Final "FC" conv: kernel size == remaining spatial extent, stride 1, no pad.
    ks = h.shape[1]
    patches, (N, _, _) = im2col(h, ks, ks, stride=1, pad=0)   # Ho = Wo = 1
    out = matmul_layer(patches, fc2d)                         # (N, n_pad) f32
    return out[:, :n_out].reshape(N, n_out, 1, 1)             # (N, nOut, 1, 1)


# ---------------------------------------------------------------------------
# Parameter construction (deterministic, mirrors _dcEncoder.__init__ shapes)
# ---------------------------------------------------------------------------
def make_params(key, nIn, nOut, nf, nLayer, sizeX):
    conv_ws, gammas, betas = [], [], []
    size = sizeX // 2
    cin, cout = nIn, nf
    for i in range(nLayer):
        key, sub = jax.random.split(key)
        conv_ws.append(0.02 * jax.random.normal(sub, (cout, cin, 4, 4),
                                                dtype=jnp.float32))
        gammas.append(jnp.ones((cout,), jnp.float32))
        betas.append(jnp.zeros((cout,), jnp.float32))
        if i < nLayer - 1:
            size = size // 2
            cin, cout = cout, cout * 2
    key, sub = jax.random.split(key)
    fc_w = 0.02 * jax.random.normal(sub, (nOut, conv_ws[-1].shape[0], size, size),
                                    dtype=jnp.float32)
    return conv_ws, gammas, betas, fc_w


if __name__ == "__main__":
    # Small config consistent with the module: nIn=3, nf=8, nLayer=3,
    # sizeX=16, nOut=32, batch=2.   16 -> 8 -> 4 -> 2 -> 1x1 output.
    nIn, nOut, nf, nLayer, sizeX, batch = 3, 32, 8, 3, 16, 2

    key = jax.random.PRNGKey(0)
    key, xk = jax.random.split(key)
    x = jax.random.normal(xk, (batch, nIn, sizeX, sizeX), dtype=jnp.float32)

    conv_ws, gammas, betas, fc_w = make_params(key, nIn, nOut, nf, nLayer, sizeX)
    prepared = prepare_params(conv_ws, gammas, betas, fc_w)   # one-time prep

    forward = jax.jit(functools.partial(dc_encoder_forward, prepared=prepared))
    out = jax.block_until_ready(forward(x))

    assert out.shape == (batch, nOut, 1, 1), out.shape
    assert bool(jnp.all(jnp.isfinite(out)))
    print("KERNEL_OK")
</pallas_src>

<mosaic_0001>
module attributes {stable_mosaic.version = 11 : i64} {
  func.func @_fused_conv_bn_relu_kernel(%arg0: i32, %arg1: memref<128x128xbf16, #tpu.memory_space<vmem>>, %arg2: memref<128x128xbf16, #tpu.memory_space<vmem>>, %arg3: memref<1x128xf32, #tpu.memory_space<vmem>>, %arg4: memref<1x128xf32, #tpu.memory_space<vmem>>, %arg5: memref<128x128xbf16, #tpu.memory_space<vmem>>) attributes {dimension_semantics = [#tpu.dimension_semantics<arbitrary>], iteration_bounds = array<i64: 1>, scalar_prefetch = 0 : i64, scratch_operands = 0 : i64, tpu.core_type = #tpu.core_type<tc>, window_params = [{pipeline_mode = #tpu.pipeline_mode<synchronous>, transform_indices = @transform_0, window_bounds = array<i64: 128, 128>}, {pipeline_mode = #tpu.pipeline_mode<synchronous>, transform_indices = @transform_1, window_bounds = array<i64: 128, 128>}, {pipeline_mode = #tpu.pipeline_mode<synchronous>, transform_indices = @transform_2, window_bounds = array<i64: 1, 128>}, {pipeline_mode = #tpu.pipeline_mode<synchronous>, transform_indices = @transform_3, window_bounds = array<i64: 1, 128>}, {pipeline_mode = #tpu.pipeline_mode<synchronous>, transform_indices = @transform_4, window_bounds = array<i64: 128, 128>}]} {
    %c0 = arith.constant 0 : index
    %c0_0 = arith.constant 0 : index
    %0 = vector.load %arg1[%c0, %c0_0] : memref<128x128xbf16, #tpu.memory_space<vmem>>, vector<128x128xbf16>
    %c0_1 = arith.constant 0 : index
    %c0_2 = arith.constant 0 : index
    %1 = vector.load %arg2[%c0_1, %c0_2] : memref<128x128xbf16, #tpu.memory_space<vmem>>, vector<128x128xbf16>
    %cst = arith.constant dense<0.000000e+00> : vector<128x128xf32>
    %2 = tpu.matmul %0, %1, %cst {dimension_numbers = #tpu.dot_dimension_numbers<[1], [0], [0], [1], [0, 0, 1, 1], [], []>} : vector<128x128xbf16>, vector<128x128xbf16>, vector<128x128xf32> -> vector<128x128xf32>
    %cst_3 = arith.constant dense<0.000000e+00> : vector<128xf32>
    %3 = vector.multi_reduction <add>, %2, %cst_3 [0] : vector<128x128xf32> to vector<128xf32>
    %4 = vector.shape_cast %3 : vector<128xf32> to vector<1x128xf32>
    %cst_4 = arith.constant 7.812500e-03 : f32
    %5 = vector.broadcast %cst_4 : f32 to vector<1x128xf32>
    %6 = arith.mulf %4, %5 : vector<1x128xf32>
    %7 = vector.broadcast %6 : vector<1x128xf32> to vector<128x128xf32>
    %8 = arith.subf %2, %7 : vector<128x128xf32>
    %9 = arith.mulf %8, %8 : vector<128x128xf32>
    %cst_5 = arith.constant dense<0.000000e+00> : vector<128xf32>
    %10 = vector.multi_reduction <add>, %9, %cst_5 [0] : vector<128x128xf32> to vector<128xf32>
    %11 = vector.shape_cast %10 : vector<128xf32> to vector<1x128xf32>
    %cst_6 = arith.constant 7.812500e-03 : f32
    %12 = vector.broadcast %cst_6 : f32 to vector<1x128xf32>
    %13 = arith.mulf %11, %12 : vector<1x128xf32>
    %cst_7 = arith.constant 9.99999974E-6 : f32
    %14 = vector.broadcast %cst_7 : f32 to vector<1x128xf32>
    %15 = arith.addf %13, %14 : vector<1x128xf32>
    %16 = math.rsqrt %15 : vector<1x128xf32>
    %c0_8 = arith.constant 0 : index
    %c0_9 = arith.constant 0 : index
    %17 = vector.load %arg3[%c0_8, %c0_9] : memref<1x128xf32, #tpu.memory_space<vmem>>, vector<1x128xf32>
    %18 = arith.mulf %17, %16 : vector<1x128xf32>
    %c0_10 = arith.constant 0 : index
    %c0_11 = arith.constant 0 : index
    %19 = vector.load %arg4[%c0_10, %c0_11] : memref<1x128xf32, #tpu.memory_space<vmem>>, vector<1x128xf32>
    %20 = arith.mulf %6, %18 : vector<1x128xf32>
    %21 = arith.subf %19, %20 : vector<1x128xf32>
    %22 = vector.broadcast %18 : vector<1x128xf32> to vector<128x128xf32>
    %23 = arith.mulf %2, %22 : vector<128x128xf32>
    %24 = vector.broadcast %21 : vector<1x128xf32> to vector<128x128xf32>
    %25 = arith.addf %23, %24 : vector<128x128xf32>
    %cst_12 = arith.constant 0.000000e+00 : f32
    %26 = vector.broadcast %cst_12 : f32 to vector<128x128xf32>
    %27 = arith.maximumf %25, %26 : vector<128x128xf32>
    %28 = arith.truncf %27 : vector<128x128xf32> to vector<128x128xbf16>
    %c0_13 = arith.constant 0 : index
    %c0_14 = arith.constant 0 : index
    %29 = vector.load %arg5[%c0_13, %c0_14] : memref<128x128xbf16, #tpu.memory_space<vmem>>, vector<128x128xbf16>
    tpu.vector_store %arg5[%c0_13, %c0_14], %28 {strides = array<i32>} : memref<128x128xbf16, #tpu.memory_space<vmem>>, vector<128x128xbf16>,
    return
  }
  func.func @transform_0(%arg0: i32) -> (i32, i32) {
    %c0_i32 = arith.constant 0 : i32
    %c0_i32_0 = arith.constant 0 : i32
    %c0_i32_1 = arith.constant 0 : i32
    return %c0_i32, %c0_i32_0 : i32, i32
  }
  func.func @transform_1(%arg0: i32) -> (i32, i32) {
    %c0_i32 = arith.constant 0 : i32
    %c0_i32_0 = arith.constant 0 : i32
    %c0_i32_1 = arith.constant 0 : i32
    return %c0_i32, %c0_i32_0 : i32, i32
  }
  func.func @transform_2(%arg0: i32) -> (i32, i32) {
    %c0_i32 = arith.constant 0 : i32
    %c0_i32_0 = arith.constant 0 : i32
    %c0_i32_1 = arith.constant 0 : i32
    return %c0_i32, %c0_i32_0 : i32, i32
  }
  func.func @transform_3(%arg0: i32) -> (i32, i32) {
    %c0_i32 = arith.constant 0 : i32
    %c0_i32_0 = arith.constant 0 : i32
    %c0_i32_1 = arith.constant 0 : i32
    return %c0_i32, %c0_i32_0 : i32, i32
  }
  func.func @transform_4(%arg0: i32) -> (i32, i32) {
    %c0_i32 = arith.constant 0 : i32
    %c0_i32_0 = arith.constant 0 : i32
    %c0_i32_1 = arith.constant 0 : i32
    return %c0_i32, %c0_i32_0 : i32, i32
  }
}

module attributes {stable_mosaic.version = 11 : i64} {
  func.func @_fused_conv_bn_relu_kernel(%arg0: i32, %arg1: memref<32x2048xbf16, #tpu.memory_space<vmem>>, %arg2: memref<2048x128xbf16, #tpu.memory_space<vmem>>, %arg3: memref<1x128xf32, #tpu.memory_space<vmem>>, %arg4: memref<1x128xf32, #tpu.memory_space<vmem>>, %arg5: memref<32x128xbf16, #tpu.memory_space<vmem>>) attributes {dimension_semantics = [#tpu.dimension_semantics<arbitrary>], iteration_bounds = array<i64: 1>, scalar_prefetch = 0 : i64, scratch_operands = 0 : i64, tpu.core_type = #tpu.core_type<tc>, window_params = [{pipeline_mode = #tpu.pipeline_mode<synchronous>, transform_indices = @transform_0, window_bounds = array<i64: 32, 2048>}, {pipeline_mode = #tpu.pipeline_mode<synchronous>, transform_indices = @transform_1, window_bounds = array<i64: 2048, 128>}, {pipeline_mode = #tpu.pipeline_mode<synchronous>, transform_indices = @transform_2, window_bounds = array<i64: 1, 128>}, {pipeline_mode = #tpu.pipeline_mode<synchronous>, transform_indices = @transform_3, window_bounds = array<i64: 1, 128>}, {pipeline_mode = #tpu.pipeline_mode<synchronous>, transform_indices = @transform_4, window_bounds = array<i64: 32, 128>}]} {
    %c0 = arith.constant 0 : index
    %c0_0 = arith.constant 0 : index
    %0 = vector.load %arg1[%c0, %c0_0] : memref<32x2048xbf16, #tpu.memory_space<vmem>>, vector<32x2048xbf16>
    %c0_1 = arith.constant 0 : index
    %c0_2 = arith.constant 0 : index
    %1 = vector.load %arg2[%c0_1, %c0_2] : memref<2048x128xbf16, #tpu.memory_space<vmem>>, vector<2048x128xbf16>
    %cst = arith.constant dense<0.000000e+00> : vector<32x128xf32>
    %2 = tpu.matmul %0, %1, %cst {dimension_numbers = #tpu.dot_dimension_numbers<[1], [0], [0], [1], [0, 0, 1, 1], [], []>} : vector<32x2048xbf16>, vector<2048x128xbf16>, vector<32x128xf32> -> vector<32x128xf32>
    %cst_3 = arith.constant dense<0.000000e+00> : vector<128xf32>
    %3 = vector.multi_reduction <add>, %2, %cst_3 [0] : vector<32x128xf32> to vector<128xf32>
    %4 = vector.shape_cast %3 : vector<128xf32> to vector<1x128xf32>
    %cst_4 = arith.constant 3.125000e-02 : f32
    %5 = vector.broadcast %cst_4 : f32 to vector<1x128xf32>
    %6 = arith.mulf %4, %5 : vector<1x128xf32>
    %7 = vector.broadcast %6 : vector<1x128xf32> to vector<32x128xf32>
    %8 = arith.subf %2, %7 : vector<32x128xf32>
    %9 = arith.mulf %8, %8 : vector<32x128xf32>
    %cst_5 = arith.constant dense<0.000000e+00> : vector<128xf32>
    %10 = vector.multi_reduction <add>, %9, %cst_5 [0] : vector<32x128xf32> to vector<128xf32>
    %11 = vector.shape_cast %10 : vector<128xf32> to vector<1x128xf32>
    %cst_6 = arith.constant 3.125000e-02 : f32
    %12 = vector.broadcast %cst_6 : f32 to vector<1x128xf32>
    %13 = arith.mulf %11, %12 : vector<1x128xf32>
    %cst_7 = arith.constant 9.99999974E-6 : f32
    %14 = vector.broadcast %cst_7 : f32 to vector<1x128xf32>
    %15 = arith.addf %13, %14 : vector<1x128xf32>
    %16 = math.rsqrt %15 : vector<1x128xf32>
    %c0_8 = arith.constant 0 : index
    %c0_9 = arith.constant 0 : index
    %17 = vector.load %arg3[%c0_8, %c0_9] : memref<1x128xf32, #tpu.memory_space<vmem>>, vector<1x128xf32>
    %18 = arith.mulf %17, %16 : vector<1x128xf32>
    %c0_10 = arith.constant 0 : index
    %c0_11 = arith.constant 0 : index
    %19 = vector.load %arg4[%c0_10, %c0_11] : memref<1x128xf32, #tpu.memory_space<vmem>>, vector<1x128xf32>
    %20 = arith.mulf %6, %18 : vector<1x128xf32>
    %21 = arith.subf %19, %20 : vector<1x128xf32>
    %22 = vector.broadcast %18 : vector<1x128xf32> to vector<32x128xf32>
    %23 = arith.mulf %2, %22 : vector<32x128xf32>
    %24 = vector.broadcast %21 : vector<1x128xf32> to vector<32x128xf32>
    %25 = arith.addf %23, %24 : vector<32x128xf32>
    %cst_12 = arith.constant 0.000000e+00 : f32
    %26 = vector.broadcast %cst_12 : f32 to vector<32x128xf32>
    %27 = arith.maximumf %25, %26 : vector<32x128xf32>
    %28 = arith.truncf %27 : vector<32x128xf32> to vector<32x128xbf16>
    %c0_13 = arith.constant 0 : index
    %c0_14 = arith.constant 0 : index
    %29 = vector.load %arg5[%c0_13, %c0_14] : memref<32x128xbf16, #tpu.memory_space<vmem>>, vector<32x128xbf16>
    tpu.vector_store %arg5[%c0_13, %c0_14], %28 {strides = array<i32>} : memref<32x128xbf16, #tpu.memory_space<vmem>>, vector<32x128xbf16>,
    return
  }
  func.func @transform_0(%arg0: i32) -> (i32, i32) {
    %c0_i32 = arith.constant 0 : i32
    %c0_i32_0 = arith.constant 0 : i32
    %c0_i32_1 = arith.constant 0 : i32
    return %c0_i32, %c0_i32_0 : i32, i32
  }
  func.func @transform_1(%arg0: i32) -> (i32, i32) {
    %c0_i32 = arith.constant 0 : i32
    %c0_i32_0 = arith.constant 0 : i32
    %c0_i32_1 = arith.constant 0 : i32
    return %c0_i32, %c0_i32_0 : i32, i32
  }
  func.func @transform_2(%arg0: i32) -> (i32, i32) {
    %c0_i32 = arith.constant 0 : i32
    %c0_i32_0 = arith.constant 0 : i32
    %c0_i32_1 = arith.constant 0 : i32
    return %c0_i32, %c0_i32_0 : i32, i32
  }
  func.func @transform_3(%arg0: i32) -> (i32, i32) {
    %c0_i32 = arith.constant 0 : i32
    %c0_i32_0 = arith.constant 0 : i32
    %c0_i32_1 = arith.constant 0 : i32
    return %c0_i32, %c0_i32_0 : i32, i32
  }
  func.func @transform_4(%arg0: i32) -> (i32, i32) {
    %c0_i32 = arith.constant 0 : i32
    %c0_i32_0 = arith.constant 0 : i32
    %c0_i32_1 = arith.constant 0 : i32
    return %c0_i32, %c0_i32_0 : i32, i32
  }
}

module attributes {stable_mosaic.version = 11 : i64} {
  func.func @_fused_conv_bn_relu_kernel(%arg0: i32, %arg1: memref<16x2048xbf16, #tpu.memory_space<vmem>>, %arg2: memref<2048x128xbf16, #tpu.memory_space<vmem>>, %arg3: memref<1x128xf32, #tpu.memory_space<vmem>>, %arg4: memref<1x128xf32, #tpu.memory_space<vmem>>, %arg5: memref<16x128xbf16, #tpu.memory_space<vmem>>) attributes {dimension_semantics = [#tpu.dimension_semantics<arbitrary>], iteration_bounds = array<i64: 1>, scalar_prefetch = 0 : i64, scratch_operands = 0 : i64, tpu.core_type = #tpu.core_type<tc>, window_params = [{pipeline_mode = #tpu.pipeline_mode<synchronous>, transform_indices = @transform_0, window_bounds = array<i64: 16, 2048>}, {pipeline_mode = #tpu.pipeline_mode<synchronous>, transform_indices = @transform_1, window_bounds = array<i64: 2048, 128>}, {pipeline_mode = #tpu.pipeline_mode<synchronous>, transform_indices = @transform_2, window_bounds = array<i64: 1, 128>}, {pipeline_mode = #tpu.pipeline_mode<synchronous>, transform_indices = @transform_3, window_bounds = array<i64: 1, 128>}, {pipeline_mode = #tpu.pipeline_mode<synchronous>, transform_indices = @transform_4, window_bounds = array<i64: 16, 128>}]} {
    %c0 = arith.constant 0 : index
    %c0_0 = arith.constant 0 : index
    %0 = vector.load %arg1[%c0, %c0_0] : memref<16x2048xbf16, #tpu.memory_space<vmem>>, vector<16x2048xbf16>
    %c0_1 = arith.constant 0 : index
    %c0_2 = arith.constant 0 : index
    %1 = vector.load %arg2[%c0_1, %c0_2] : memref<2048x128xbf16, #tpu.memory_space<vmem>>, vector<2048x128xbf16>
    %cst = arith.constant dense<0.000000e+00> : vector<16x128xf32>
    %2 = tpu.matmul %0, %1, %cst {dimension_numbers = #tpu.dot_dimension_numbers<[1], [0], [0], [1], [0, 0, 1, 1], [], []>} : vector<16x2048xbf16>, vector<2048x128xbf16>, vector<16x128xf32> -> vector<16x128xf32>
    %cst_3 = arith.constant dense<0.000000e+00> : vector<128xf32>
    %3 = vector.multi_reduction <add>, %2, %cst_3 [0] : vector<16x128xf32> to vector<128xf32>
    %4 = vector.shape_cast %3 : vector<128xf32> to vector<1x128xf32>
    %cst_4 = arith.constant 1.250000e-01 : f32
    %5 = vector.broadcast %cst_4 : f32 to vector<1x128xf32>
    %6 = arith.mulf %4, %5 : vector<1x128xf32>
    %7 = tpu.iota {dimensions = array<i32: 0>} : vector<16x128xi32>
    %c8_i32 = arith.constant 8 : i32
    %8 = vector.broadcast %c8_i32 : i32 to vector<16x128xi32>
    %9 = arith.cmpi slt, %7, %8 : vector<16x128xi32>
    %10 = vector.broadcast %6 : vector<1x128xf32> to vector<16x128xf32>
    %11 = arith.subf %2, %10 : vector<16x128xf32>
    %cst_5 = arith.constant 0.000000e+00 : f32
    %12 = vector.broadcast %cst_5 : f32 to vector<16x128xf32>
    %13 = arith.select %9, %11, %12 : vector<16x128xi1>, vector<16x128xf32>
    %14 = arith.mulf %13, %13 : vector<16x128xf32>
    %cst_6 = arith.constant dense<0.000000e+00> : vector<128xf32>
    %15 = vector.multi_reduction <add>, %14, %cst_6 [0] : vector<16x128xf32> to vector<128xf32>
    %16 = vector.shape_cast %15 : vector<128xf32> to vector<1x128xf32>
    %cst_7 = arith.constant 1.250000e-01 : f32
    %17 = vector.broadcast %cst_7 : f32 to vector<1x128xf32>
    %18 = arith.mulf %16, %17 : vector<1x128xf32>
    %cst_8 = arith.constant 9.99999974E-6 : f32
    %19 = vector.broadcast %cst_8 : f32 to vector<1x128xf32>
    %20 = arith.addf %18, %19 : vector<1x128xf32>
    %21 = math.rsqrt %20 : vector<1x128xf32>
    %c0_9 = arith.constant 0 : index
    %c0_10 = arith.constant 0 : index
    %22 = vector.load %arg3[%c0_9, %c0_10] : memref<1x128xf32, #tpu.memory_space<vmem>>, vector<1x128xf32>
    %23 = arith.mulf %22, %21 : vector<1x128xf32>
    %c0_11 = arith.constant 0 : index
    %c0_12 = arith.constant 0 : index
    %24 = vector.load %arg4[%c0_11, %c0_12] : memref<1x128xf32, #tpu.memory_space<vmem>>, vector<1x128xf32>
    %25 = arith.mulf %6, %23 : vector<1x128xf32>
    %26 = arith.subf %24, %25 : vector<1x128xf32>
    %27 = vector.broadcast %23 : vector<1x128xf32> to vector<16x128xf32>
    %28 = arith.mulf %2, %27 : vector<16x128xf32>
    %29 = vector.broadcast %26 : vector<1x128xf32> to vector<16x128xf32>
    %30 = arith.addf %28, %29 : vector<16x128xf32>
    %cst_13 = arith.constant 0.000000e+00 : f32
    %31 = vector.broadcast %cst_13 : f32 to vector<16x128xf32>
    %32 = arith.maximumf %30, %31 : vector<16x128xf32>
    %33 = arith.truncf %32 : vector<16x128xf32> to vector<16x128xbf16>
    %c0_14 = arith.constant 0 : index
    %c0_15 = arith.constant 0 : index
    %34 = vector.load %arg5[%c0_14, %c0_15] : memref<16x128xbf16, #tpu.memory_space<vmem>>, vector<16x128xbf16>
    tpu.vector_store %arg5[%c0_14, %c0_15], %33 {strides = array<i32>} : memref<16x128xbf16, #tpu.memory_space<vmem>>, vector<16x128xbf16>,
    return
  }
  func.func @transform_0(%arg0: i32) -> (i32, i32) {
    %c0_i32 = arith.constant 0 : i32
    %c0_i32_0 = arith.constant 0 : i32
    %c0_i32_1 = arith.constant 0 : i32
    return %c0_i32, %c0_i32_0 : i32, i32
  }
  func.func @transform_1(%arg0: i32) -> (i32, i32) {
    %c0_i32 = arith.constant 0 : i32
    %c0_i32_0 = arith.constant 0 : i32
    %c0_i32_1 = arith.constant 0 : i32
    return %c0_i32, %c0_i32_0 : i32, i32
  }
  func.func @transform_2(%arg0: i32) -> (i32, i32) {
    %c0_i32 = arith.constant 0 : i32
    %c0_i32_0 = arith.constant 0 : i32
    %c0_i32_1 = arith.constant 0 : i32
    return %c0_i32, %c0_i32_0 : i32, i32
  }
  func.func @transform_3(%arg0: i32) -> (i32, i32) {
    %c0_i32 = arith.constant 0 : i32
    %c0_i32_0 = arith.constant 0 : i32
    %c0_i32_1 = arith.constant 0 : i32
    return %c0_i32, %c0_i32_0 : i32, i32
  }
  func.func @transform_4(%arg0: i32) -> (i32, i32) {
    %c0_i32 = arith.constant 0 : i32
    %c0_i32_0 = arith.constant 0 : i32
    %c0_i32_1 = arith.constant 0 : i32
    return %c0_i32, %c0_i32_0 : i32, i32
  }
}

module attributes {stable_mosaic.version = 11 : i64} {
  func.func @_matmul_kernel(%arg0: i32, %arg1: memref<16x512xbf16, #tpu.memory_space<vmem>>, %arg2: memref<512x128xbf16, #tpu.memory_space<vmem>>, %arg3: memref<16x128xf32, #tpu.memory_space<vmem>>) attributes {dimension_semantics = [#tpu.dimension_semantics<parallel>], iteration_bounds = array<i64: 1>, scalar_prefetch = 0 : i64, scratch_operands = 0 : i64, tpu.core_type = #tpu.core_type<tc>, window_params = [{transform_indices = @transform_0, window_bounds = array<i64: 16, 512>}, {pipeline_mode = #tpu.pipeline_mode<synchronous>, transform_indices = @transform_1, window_bounds = array<i64: 512, 128>}, {transform_indices = @transform_2, window_bounds = array<i64: 16, 128>}]} {
    %c0 = arith.constant 0 : index
    %c0_0 = arith.constant 0 : index
    %0 = vector.load %arg1[%c0, %c0_0] : memref<16x512xbf16, #tpu.memory_space<vmem>>, vector<16x512xbf16>
    %c0_1 = arith.constant 0 : index
    %c0_2 = arith.constant 0 : index
    %1 = vector.load %arg2[%c0_1, %c0_2] : memref<512x128xbf16, #tpu.memory_space<vmem>>, vector<512x128xbf16>
    %cst = arith.constant dense<0.000000e+00> : vector<16x128xf32>
    %2 = tpu.matmul %0, %1, %cst {dimension_numbers = #tpu.dot_dimension_numbers<[1], [0], [0], [1], [0, 0, 1, 1], [], []>} : vector<16x512xbf16>, vector<512x128xbf16>, vector<16x128xf32> -> vector<16x128xf32>
    %c0_3 = arith.constant 0 : index
    %c0_4 = arith.constant 0 : index
    %3 = vector.load %arg3[%c0_3, %c0_4] : memref<16x128xf32, #tpu.memory_space<vmem>>, vector<16x128xf32>
    tpu.vector_store %arg3[%c0_3, %c0_4], %2 {strides = array<i32>} : memref<16x128xf32, #tpu.memory_space<vmem>>, vector<16x128xf32>,
    return
  }
  func.func @transform_0(%arg0: i32) -> (i32, i32) {
    %c0_i32 = arith.constant 0 : i32
    %c0_i32_0 = arith.constant 0 : i32
    return %arg0, %c0_i32 : i32, i32
  }
  func.func @transform_1(%arg0: i32) -> (i32, i32) {
    %c0_i32 = arith.constant 0 : i32
    %c0_i32_0 = arith.constant 0 : i32
    %c0_i32_1 = arith.constant 0 : i32
    return %c0_i32, %c0_i32_0 : i32, i32
  }
  func.func @transform_2(%arg0: i32) -> (i32, i32) {
    %c0_i32 = arith.constant 0 : i32
    %c0_i32_0 = arith.constant 0 : i32
    return %arg0, %c0_i32 : i32, i32
  }
}

</mosaic_0001>

<bundles_post_ra>
// kernel: dc_encoder_forward.4
= control target key start
LH: loop header
LB: loop body
LE: loop exit
PB: predicated region body
PF: predicated region fallthrough
CT: control target
= control target key end

     0   :  { %s849_s1 = inlined_call_operand.vmem [shape: bf16[128,128], index: 1, kind: input, shape index: {}]   ;;  %s850_s0 = inlined_call_operand.vmem [shape: bf16[128,128], index: 0, kind: input, shape index: {}]   ;;  %s851_s2 = inlined_call_operand.vmem [shape: f32[1,128], index: 2, kind: input, shape index: {}]   ;;  %s852_s3 = inlined_call_operand.vmem [shape: f32[1,128], index: 3, kind: input, shape index: {}]   ;;  %s853_s4 = inlined_call_operand.vmem [shape: bf16[128,128], index: 4, kind: output, shape index: {}]  }
   0x1   :  { %v629_v0 = vld [vmem:[%s849_s1 + $0x38] sm:$0xff]   ;;  %v630_v1 = vld [vmem:[%s849_s1 + $0x30] sm:$0xff]   ;;  %v631_v2 = vld [vmem:[%s849_s1 + $0x28] sm:$0xff]  }
   0x2   :  { %581 = vmatprep.subr.bf16.mxu0 %v629_v0  ;;  %613 = vmatprep.subr.bf16.mxu1 %v629_v0  ;;  %v632_v3 = vld [vmem:[%s849_s1 + $0x20] sm:$0xff]   ;;  %v633_v5 = vld [vmem:[%s849_s1 + $0x18] sm:$0xff]   ;;  %v634_v7 = vld [vmem:[%s849_s1 + $0x10] sm:$0xff]  }
   0x3   :  { %582 = vmatpush3.bf16.msra.mxu0 %v629_v0  ;;  %621 = vmatpush3.bf16.msra.mxu1 %v629_v0  ;;  %v637_v4 = vld [vmem:[%s850_s0] sm:$0xff]   ;;  %v635_v8 = vld [vmem:[%s849_s1 + $0x8] sm:$0xff]   ;;  %v639_v12 = vld [vmem:[%s850_s0 + $0x10] sm:$0xff]  }
   0x4   :  { %583 = vmatprep.subr.bf16.mxu0 %v630_v1  ;;  %614 = vmatprep.subr.bf16.mxu1 %v630_v1  ;;  %v641_v6 = vld [vmem:[%s850_s0 + $0x20] sm:$0xff]   ;;  %v638_v10 = vld [vmem:[%s850_s0 + $0x8] sm:$0xff]   ;;  %v643_v13 = vld [vmem:[%s850_s0 + $0x30] sm:$0xff]  }
   0x5   :  { %597 = vmatprep.mubr.bf16.mxu0 %v637_v4  ;;  %605 = vmatprep.mubr.bf16.mxu1 %v641_v6  ;;  %v636_v9 = vld [vmem:[%s849_s1] sm:$0xff]   ;;  %v642_v11 = vld [vmem:[%s850_s0 + $0x28] sm:$0xff]   ;;  %v640_v14 = vld [vmem:[%s850_s0 + $0x18] sm:$0xff]  }
   0x6   :  { %v644_v15 = vld [vmem:[%s850_s0 + $0x38] sm:$0xff]  }
   0x7   :  { %584 = vmatpush3.bf16.msra.mxu0 %v630_v1  ;;  %622 = vmatpush3.bf16.msra.mxu1 %v630_v1 }
   0x8   :  { %585 = vmatprep.subr.bf16.mxu0 %v631_v2  ;;  %615 = vmatprep.subr.bf16.mxu1 %v631_v2 }
   0xb   :  { %586 = vmatpush3.bf16.msra.mxu0 %v631_v2  ;;  %623 = vmatpush3.bf16.msra.mxu1 %v631_v2 }
   0xc   :  { %587 = vmatprep.subr.bf16.mxu0 %v632_v3  ;;  %616 = vmatprep.subr.bf16.mxu1 %v632_v3 }
   0xf   :  { %588 = vmatpush3.bf16.msra.mxu0 %v632_v3  ;;  %624 = vmatpush3.bf16.msra.mxu1 %v632_v3 }
  0x10   :  { %589 = vmatprep.subr.bf16.mxu0 %v633_v5  ;;  %617 = vmatprep.subr.bf16.mxu1 %v633_v5 }
  0x13   :  { %590 = vmatpush3.bf16.msra.mxu0 %v633_v5  ;;  %625 = vmatpush3.bf16.msra.mxu1 %v633_v5 }
  0x14   :  { %591 = vmatprep.subr.bf16.mxu0 %v634_v7  ;;  %618 = vmatprep.subr.bf16.mxu1 %v634_v7 }
  0x17   :  { %592 = vmatpush3.bf16.msra.mxu0 %v634_v7  ;;  %626 = vmatpush3.bf16.msra.mxu1 %v634_v7 }
  0x18   :  { %593 = vmatprep.subr.bf16.mxu0 %v635_v8  ;;  %619 = vmatprep.subr.bf16.mxu1 %v635_v8 }
  0x1b   :  { %594 = vmatpush3.bf16.msra.mxu0 %v635_v8  ;;  %627 = vmatpush3.bf16.msra.mxu1 %v635_v8 }
  0x1c   :  { %595 = vmatprep.subr.bf16.mxu0 %v636_v9  ;;  %620 = vmatprep.subr.bf16.mxu1 %v636_v9 }
  0x1f   :  { %596 = vmatpush3.bf16.msra.mxu0 %v636_v9  ;;  %628 = vmatpush3.bf16.msra.mxu1 %v636_v9 }
  0x22   :  { %598 = vmatmul.mubr.bf16.vlgmr.msra.gmra.mxu0 %v638_v10  ;;  %606 = vmatmul.mubr.bf16.vlgmr.msra.gmra.mxu1 %v642_v11 }
  0x23   :  { %601 = vmatprep.mubr.bf16.mxu0 %v639_v12  ;;  %609 = vmatprep.mubr.bf16.mxu1 %v643_v13 }
  0x2a   :  { %602 = vmatmul.mubr.bf16.gmra.mxu0 %v640_v14  ;;  %610 = vmatmul.mubr.bf16.gmra.mxu1 %v644_v15 }
  0xe2   :  { %v720_v16 = vpop.f32.mrf.mxu0  ;;  %v724_v18 = vpop.f32.mrf.mxu1 }
  0xe4   :  { %v722_v17 = vpop.f32.mrf.mxu0  ;;  %v730_v21 = vpop.f32.mrf.mxu1 }
  0xe6   :  { %v726_v19 = vpop.f32.mrf.mxu0  ;;  %v739_v26 = vpop.f32.mrf.mxu1 }
  0xe8   :  { %v728_v20 = vpop.f32.mrf.mxu0  ;;  %v747_v31 = vpop.f32.mrf.mxu1 }
  0xe9   :  { %v243_v22 = vadd.f32 %v728_v20, %v722_v17 }
  0xea   :  { %v734_v23 = vpop.f32.mrf.mxu0  ;;  %v751_v34 = vpop.f32.mrf.mxu1 }
  0xeb   :  { %v244_v24 = vadd.f32 %v720_v16, %v243_v22 }
  0xec   :  { %v737_v25 = vpop.f32.mrf.mxu0  ;;  %v755_v37 = vpop.f32.mrf.mxu1 }
  0xed   :  { %v245_v27 = vadd.f32 %v726_v19, %v244_v24 }
  0xee   :  { %v742_v28 = vpop.f32.mrf.mxu0  ;;  %v759_v40 = vpop.f32.mrf.mxu1 }
  0xef   :  { %v246_v29 = vadd.f32 %v245_v27, %v737_v25 }
  0xf0   :  { %v745_v30 = vpop.f32.mrf.mxu0  ;;  %v763_v43 = vpop.f32.mrf.mxu1 }
  0xf1   :  { %v247_v32 = vadd.f32 %v246_v29, %v745_v30 }
  0xf3   :  { %v248_v33 = vadd.f32 %v734_v23, %v247_v32 }
  0xf5   :  { %v249_v35 = vadd.f32 %v742_v28, %v248_v33 }
  0xf7   :  { %v250_v36 = vadd.f32 %v249_v35, %v730_v21 }
  0xf9   :  { %v251_v38 = vadd.f32 %v250_v36, %v747_v31 }
  0xfb   :  { %v252_v39 = vadd.f32 %v724_v18, %v251_v38 }
  0xfd   :  { %v253_v41 = vadd.f32 %v739_v26, %v252_v39 }
  0xff   :  { %v254_v42 = vadd.f32 %v253_v41, %v755_v37 }
 0x101   :  { %v255_v44 = vadd.f32 %v254_v42, %v763_v43 }
 0x103   :  { %v256_v45 = vadd.f32 %v751_v34, %v255_v44 }
 0x105   :  { %v257_v46 = vadd.f32 %v759_v40, %v256_v45 }
 0x107   :  { %v258_v47 = vrot.slane %v257_v46, 4 }
 0x109   :  { %v259_v48 = vadd.f32 %v258_v47, %v257_v46 }
 0x10b   :  { %v260_v49 = vrot.slane %v259_v48, 2 }
 0x10d   :  { %v261_v50 = vadd.f32 %v260_v49, %v259_v48 }
 0x10f   :  { %v262_v51 = vrot.slane %v261_v50, 1 }
 0x111   :  { %v263_v52 = vadd.f32 %v262_v51, %v261_v50 }
 0x113   :  { %v768_v53 = vmul.f32 0.0078125, %v263_v52 }
 0x115   :  { %v265_v54 = vsub.f32 %v722_v17, %v768_v53  ;;  %v266_v55 = vsub.f32 %v728_v20, %v768_v53  ;;  %v267_v56 = vsub.f32 %v720_v16, %v768_v53  ;;  %v268_v59 = vsub.f32 %v726_v19, %v768_v53 }
 0x116   :  { %v269_v60 = vsub.f32 %v737_v25, %v768_v53  ;;  %v270_v63 = vsub.f32 %v745_v30, %v768_v53  ;;  %v271_v2 = vsub.f32 %v734_v23, %v768_v53  ;;  %v272_v5 = vsub.f32 %v742_v28, %v768_v53 }
 0x117   :  { %v281_v57 = vmul.f32 %v265_v54, %v265_v54  ;;  %v282_v58 = vmul.f32 %v266_v55, %v266_v55  ;;  %v283_v61 = vmul.f32 %v267_v56, %v267_v56  ;;  %v284_v0 = vmul.f32 %v268_v59, %v268_v59 }
 0x118   :  { %v285_v3 = vmul.f32 %v269_v60, %v269_v60  ;;  %v286_v6 = vmul.f32 %v270_v63, %v270_v63  ;;  %v273_v8 = vsub.f32 %v730_v21, %v768_v53  ;;  %v287_v9 = vmul.f32 %v271_v2, %v271_v2 }
 0x119   :  { %v297_v62 = vadd.f32 %v282_v58, %v281_v57  ;;  %v274_v11 = vsub.f32 %v747_v31, %v768_v53  ;;  %v288_v12 = vmul.f32 %v272_v5, %v272_v5  ;;  %v275_v14 = vsub.f32 %v724_v18, %v768_v53 }
 0x11a   :  { %v289_v15 = vmul.f32 %v273_v8, %v273_v8  ;;  %v276_v24 = vsub.f32 %v739_v26, %v768_v53  ;;  %v277_v32 = vsub.f32 %v755_v37, %v768_v53  ;;  %v278_v36 = vsub.f32 %v763_v43, %v768_v53 }
 0x11b   :  { %v298_v1 = vadd.f32 %v297_v62, %v283_v61  ;;  %v290_v27 = vmul.f32 %v274_v11, %v274_v11  ;;  %v291_v33 = vmul.f32 %v275_v14, %v275_v14  ;;  %v279_v41 = vsub.f32 %v751_v34, %v768_v53 }
 0x11c   :  { %v292_v38 = vmul.f32 %v276_v24, %v276_v24  ;;  %v293_v42 = vmul.f32 %v277_v32, %v277_v32  ;;  %v280_v45 = vsub.f32 %v759_v40, %v768_v53  ;;  %v294_v46 = vmul.f32 %v278_v36, %v278_v36 }
 0x11d   :  { %v299_v4 = vadd.f32 %v298_v1, %v284_v0  ;;  %v295_v48 = vmul.f32 %v279_v41, %v279_v41  ;;  %v327_v62 = vlaneseq  ;;  %v321_v0 = vld [vmem:[%s851_s2] sm:$0x1] }
 0x11e   :  { %v296_v50 = vmul.f32 %v280_v45, %v280_v45 }
 0x11f   :  { %v300_v7 = vadd.f32 %v299_v4, %v285_v3  ;;  %v328_v63 = vshrl.u32 %v327_v62, 7  ;;  %v323_v4 = vld [vmem:[%s852_s3] sm:$0x1] }
 0x121   :  { %v301_v10 = vadd.f32 %v300_v7, %v286_v6  ;;  %v329_v1 = vsub.s32 0, %v328_v63 }
 0x123   :  { %v302_v13 = vadd.f32 %v301_v10, %v287_v9 }
 0x125   :  { %v303_v22 = vadd.f32 %v302_v13, %v288_v12 }
 0x127   :  { %v304_v29 = vadd.f32 %v303_v22, %v289_v15 }
 0x129   :  { %v305_v35 = vadd.f32 %v304_v29, %v290_v27 }
 0x12b   :  { %v306_v39 = vadd.f32 %v305_v35, %v291_v33 }
 0x12d   :  { %v307_v44 = vadd.f32 %v306_v39, %v292_v38 }
 0x12f   :  { %v308_v47 = vadd.f32 %v307_v44, %v293_v42 }
 0x131   :  { %v309_v49 = vadd.f32 %v308_v47, %v294_v46 }
 0x133   :  { %v310_v51 = vadd.f32 %v309_v49, %v295_v48 }
 0x135   :  { %v311_v52 = vadd.f32 %v310_v51, %v296_v50 }
 0x137   :  { %v312_v54 = vrot.slane %v311_v52, 4 }
 0x139   :  { %v313_v55 = vadd.f32 %v312_v54, %v311_v52 }
 0x13b   :  { %v314_v56 = vrot.slane %v313_v55, 2 }
 0x13d   :  { %v315_v57 = vadd.f32 %v314_v56, %v313_v55 }
 0x13f   :  { %v316_v58 = vrot.slane %v315_v57, 1 }
 0x141   :  { %v317_v59 = vadd.f32 %v316_v58, %v315_v57 }
 0x143   :  { %v318_v60 = vmul.f32 0.0078125, %v317_v59 }
 0x145   :  { %v319_v61 = vadd.f32 1e-05, %v318_v60 }
 0x147   :  { %645 = vrsqrt.f32 %v319_v61 }
 0x154   :  { %v646_v2 = vpop.eup %645 }
 0x155   :  { %v322_v3 = vmul.f32 %v646_v2, %v321_v0 }
 0x157   :  { %v324_v5 = vmul.f32 %v322_v3, %v768_v53  ;;  %v330_v6 = vrot.slane %v322_v3, %v329_v1 }
 0x159   :  { %v325_v7 = vsub.f32 %v323_v4, %v324_v5  ;;  %v332_v8 = vmul.f32 %v330_v6, %v722_v17  ;;  %v333_v9 = vmul.f32 %v330_v6, %v728_v20  ;;  %v334_v10 = vmul.f32 %v720_v16, %v330_v6 }
 0x15a   :  { %v335_v11 = vmul.f32 %v726_v19, %v330_v6  ;;  %v336_v12 = vmul.f32 %v330_v6, %v737_v25  ;;  %v337_v13 = vmul.f32 %v330_v6, %v745_v30  ;;  %v338_v14 = vmul.f32 %v734_v23, %v330_v6 }
 0x15b   :  { %v339_v15 = vmul.f32 %v742_v28, %v330_v6  ;;  %v340_v53 = vmul.f32 %v330_v6, %v730_v21  ;;  %v341_v22 = vmul.f32 %v330_v6, %v747_v31  ;;  %v342_v17 = vmul.f32 %v724_v18, %v330_v6 }
 0x15c   :  { %v343_v20 = vmul.f32 %v739_v26, %v330_v6  ;;  %v352_v24 = vrot.slane %v325_v7, %v329_v1  ;;  %v344_v16 = vmul.f32 %v330_v6, %v755_v37  ;;  %v345_v19 = vmul.f32 %v330_v6, %v763_v43 }
 0x15d   :  { %v346_v25 = vmul.f32 %v751_v34, %v330_v6  ;;  %v347_v30 = vmul.f32 %v759_v40, %v330_v6 }
 0x15e   :  { %v354_v23 = vadd.f32 %v352_v24, %v332_v8  ;;  %v355_v27 = vadd.f32 %v352_v24, %v333_v9  ;;  %v356_v28 = vadd.f32 %v352_v24, %v334_v10  ;;  %v357_v29 = vadd.f32 %v352_v24, %v335_v11 }
 0x15f   :  { %v358_v21 = vadd.f32 %v352_v24, %v336_v12  ;;  %v359_v32 = vadd.f32 %v352_v24, %v337_v13  ;;  %v360_v31 = vadd.f32 %v352_v24, %v338_v14  ;;  %v361_v33 = vadd.f32 %v352_v24, %v339_v15 }
 0x160   :  { %v362_v18 = vadd.f32 %v352_v24, %v340_v53  ;;  %v363_v35 = vadd.f32 %v352_v24, %v341_v22  ;;  %v364_v26 = vadd.f32 %v352_v24, %v342_v17  ;;  %v365_v36 = vadd.f32 %v352_v24, %v343_v20 }
 0x161   :  { %v366_v38 = vadd.f32 %v352_v24, %v344_v16  ;;  %v367_v37 = vadd.f32 %v352_v24, %v345_v19  ;;  %v368_v39 = vadd.f32 %v352_v24, %v346_v25  ;;  %v369_v43 = vadd.f32 %v352_v24, %v347_v30 }
 0x162   :  { %v370_v41 = vmax.f32 %v354_v23, 0.0  ;;  %v371_v34 = vmax.f32 %v355_v27, 0.0  ;;  %v372_v42 = vmax.f32 %v356_v28, 0.0  ;;  %v373_v40 = vmax.f32 %v357_v29, 0.0 }
 0x163   :  { %v374_v44 = vmax.f32 %v358_v21, 0.0  ;;  %v375_v45 = vmax.f32 %v359_v32, 0.0  ;;  %v376_v46 = vmax.f32 %v360_v31, 0.0  ;;  %v377_v47 = vmax.f32 %v361_v33, 0.0 }
 0x164   :  { %v378_v48 = vmax.f32 %v362_v18, 0.0  ;;  %v379_v49 = vmax.f32 %v363_v35, 0.0  ;;  %v380_v50 = vmax.f32 %v364_v26, 0.0  ;;  %v381_v51 = vmax.f32 %v365_v36, 0.0 }
 0x165   :  { %v382_v52 = vmax.f32 %v366_v38, 0.0  ;;  %v383_v54 = vmax.f32 %v367_v37, 0.0  ;;  %v384_v55 = vmax.f32 %v368_v39, 0.0  ;;  %v385_v56 = vmax.f32 %v369_v43, 0.0 }
 0x166   :  { %v521_v57 = vpack.c.bf16 %v371_v34, %v370_v41  ;;  %v526_v58 = vpack.c.bf16 %v373_v40, %v372_v42  ;;  %v531_v59 = vpack.c.bf16 %v375_v45, %v374_v44  ;;  %v536_v60 = vpack.c.bf16 %v377_v47, %v376_v46 }
 0x167   :  { %v541_v61 = vpack.c.bf16 %v379_v49, %v378_v48  ;;  %v546_v62 = vpack.c.bf16 %v381_v51, %v380_v50  ;;  %v551_v63 = vpack.c.bf16 %v383_v54, %v382_v52  ;;  %v556_v0 = vpack.c.bf16 %v385_v56, %v384_v55 }
 0x168   :  { %522 = vst [vmem:[%s853_s4] sm:$0xff] %v521_v57   ;;  %558 = vst [vmem:[%s853_s4 + $0x8] sm:$0xff] %v526_v58  }
 0x169   :  { %559 = vst [vmem:[%s853_s4 + $0x10] sm:$0xff] %v531_v59   ;;  %560 = vst [vmem:[%s853_s4 + $0x18] sm:$0xff] %v536_v60  }
 0x16a   :  { %561 = vst [vmem:[%s853_s4 + $0x20] sm:$0xff] %v541_v61   ;;  %562 = vst [vmem:[%s853_s4 + $0x28] sm:$0xff] %v546_v62  }
 0x16b   :  { %563 = vst [vmem:[%s853_s4 + $0x30] sm:$0xff] %v551_v63   ;;  %564 = vst [vmem:[%s853_s4 + $0x38] sm:$0xff] %v556_v0  }

// kernel: dc_encoder_forward.5
= control target key start
LH: loop header
LB: loop body
LE: loop exit
PB: predicated region body
PF: predicated region fallthrough
CT: control target
= control target key end

     0   :  { %s2759_s1 = inlined_call_operand.vmem [shape: bf16[2048,128], index: 1, kind: input, shape index: {}]   ;;  %s2760_s0 = inlined_call_operand.vmem [shape: bf16[32,2048], index: 0, kind: input, shape index: {}]   ;;  %s2761_s2 = inlined_call_operand.vmem [shape: f32[1,128], index: 2, kind: input, shape index: {}]   ;;  %s2762_s3 = inlined_call_operand.vmem [shape: f32[1,128], index: 3, kind: input, shape index: {}]   ;;  %s2763_s4 = inlined_call_operand.vmem [shape: bf16[32,128], index: 4, kind: output, shape index: {}]  }
   0x1   :  { %v2112_v0 = vld [vmem:[%s2759_s1 + $0x78] sm:$0xff]   ;;  %v2116_v4 = vld [vmem:[%s2759_s1 + $0x70] sm:$0xff]   ;;  %v2120_v8 = vld [vmem:[%s2759_s1 + $0x68] sm:$0xff]  }
   0x2   :  { %v2113_v1 = vld [vmem:[%s2759_s1 + $0xf8] sm:$0xff]   ;;  %1888 = vmatprep.subr.bf16.mxu0 %v2112_v0  ;;  %v2117_v5 = vld [vmem:[%s2759_s1 + $0xf0] sm:$0xff]   ;;  %v2121_v9 = vld [vmem:[%s2759_s1 + $0xe8] sm:$0xff]  }
   0x3   :  { %v2114_v2 = vld [vmem:[%s2759_s1 + $0x38] sm:$0xff]   ;;  %1916 = vmatprep.subr.bf16.mxu1 %v2113_v1  ;;  %v2118_v6 = vld [vmem:[%s2759_s1 + $0x30] sm:$0xff]   ;;  %v2122_v10 = vld [vmem:[%s2759_s1 + $0x28] sm:$0xff]  }
   0x4   :  { %v2115_v3 = vld [vmem:[%s2759_s1 + $0xb8] sm:$0xff]   ;;  %1889 = vmatpush3.bf16.msra.mxu0 %v2114_v2  ;;  %v2119_v7 = vld [vmem:[%s2759_s1 + $0xb0] sm:$0xff]   ;;  %v2123_v11 = vld [vmem:[%s2759_s1 + $0xa8] sm:$0xff]  }
   0x5   :  { %1917 = vmatpush3.bf16.msra.mxu1 %v2115_v3  ;;  %1890 = vmatprep.subr.bf16.mxu0 %v2116_v4  ;;  %v2124_v12 = vld [vmem:[%s2759_s1 + $0x60] sm:$0xff]   ;;  %v2128_v16 = vld [vmem:[%s2759_s1 + $0x58] sm:$0xff]   ;;  %v2132_v20 = vld [vmem:[%s2759_s1 + $0x50] sm:$0xff]  }
   0x6   :  { %1918 = vmatprep.subr.bf16.mxu1 %v2117_v5  ;;  %v2125_v13 = vld [vmem:[%s2759_s1 + $0xe0] sm:$0xff]   ;;  %v2129_v17 = vld [vmem:[%s2759_s1 + $0xd8] sm:$0xff]   ;;  %v2133_v21 = vld [vmem:[%s2759_s1 + $0xd0] sm:$0xff]  }
   0x7   :  { %v2126_v14 = vld [vmem:[%s2759_s1 + $0x20] sm:$0xff]   ;;  %v2130_v18 = vld [vmem:[%s2759_s1 + $0x18] sm:$0xff]   ;;  %v2134_v22 = vld [vmem:[%s2759_s1 + $0x10] sm:$0xff]  }
   0x8   :  { %1891 = vmatpush3.bf16.msra.mxu0 %v2118_v6  ;;  %v2127_v15 = vld [vmem:[%s2759_s1 + $0xa0] sm:$0xff]   ;;  %v2131_v19 = vld [vmem:[%s2759_s1 + $0x98] sm:$0xff]   ;;  %v2135_v23 = vld [vmem:[%s2759_s1 + $0x90] sm:$0xff]  }
   0x9   :  { %1919 = vmatpush3.bf16.msra.mxu1 %v2119_v7  ;;  %1892 = vmatprep.subr.bf16.mxu0 %v2120_v8  ;;  %v2136_v24 = vld [vmem:[%s2759_s1 + $0x48] sm:$0xff]   ;;  %v2140_v28 = vld [vmem:[%s2759_s1 + $0x40] sm:$0xff]   ;;  %v2144_v40 = vld [vmem:[%s2759_s1 + $0x178] sm:$0xff]  }
   0xa   :  { %1920 = vmatprep.subr.bf16.mxu1 %v2121_v9  ;;  %v2137_v25 = vld [vmem:[%s2759_s1 + $0xc8] sm:$0xff]   ;;  %v2141_v29 = vld [vmem:[%s2759_s1 + $0xc0] sm:$0xff]   ;;  %v2145_v41 = vld [vmem:[%s2759_s1 + $0x1f8] sm:$0xff]  }
   0xb   :  { %v2138_v26 = vld [vmem:[%s2759_s1 + $0x8] sm:$0xff]   ;;  %v2142_v30 = vld [vmem:[%s2759_s1] sm:$0xff]   ;;  %v2146_v42 = vld [vmem:[%s2759_s1 + $0x138] sm:$0xff]  }
   0xc   :  { %1893 = vmatpush3.bf16.msra.mxu0 %v2122_v10  ;;  %v2139_v27 = vld [vmem:[%s2759_s1 + $0x88] sm:$0xff]   ;;  %v2143_v31 = vld [vmem:[%s2759_s1 + $0x80] sm:$0xff]   ;;  %v2147_v43 = vld [vmem:[%s2759_s1 + $0x1b8] sm:$0xff]  }
   0xd   :  { %1921 = vmatpush3.bf16.msra.mxu1 %v2123_v11  ;;  %1894 = vmatprep.subr.bf16.mxu0 %v2124_v12  ;;  %v18_v32 = vld [vmem:[%s2760_s0] sm:$0xff]  ;;  %v19_v34 = vld [vmem:[%s2760_s0 + $0x8] sm:$0xff]  ;;  %v2148_v44 = vld [vmem:[%s2759_s1 + $0x170] sm:$0xff]  }
   0xe   :  { %1922 = vmatprep.subr.bf16.mxu1 %v2125_v13  ;;  %v26_v33 = vld [vmem:[%s2760_s0 + $0x40] sm:$0xff]  ;;  %v27_v37 = vld [vmem:[%s2760_s0 + $0x48] sm:$0xff]  ;;  %v2149_v45 = vld [vmem:[%s2759_s1 + $0x1f0] sm:$0xff]  }
   0xf   :  { %v1709_v35 = vcombine.low %v18_v32, %v26_v33  ;;  %v1710_v36 = vcombine.high %v18_v32, %v26_v33  ;;  %v1711_v38 = vcombine.low %v19_v34, %v27_v37  ;;  %v1712_v39 = vcombine.high %v19_v34, %v27_v37  ;;  %v2150_v46 = vld [vmem:[%s2759_s1 + $0x130] sm:$0xff]   ;;  %v2152_v48 = vld [vmem:[%s2759_s1 + $0x168] sm:$0xff]   ;;  %v2156_v52 = vld [vmem:[%s2759_s1 + $0x160] sm:$0xff]  }
  0x10   :  { %1895 = vmatpush3.bf16.msra.mxu0 %v2126_v14  ;;  %v2151_v47 = vld [vmem:[%s2759_s1 + $0x1b0] sm:$0xff]   ;;  %v2153_v49 = vld [vmem:[%s2759_s1 + $0x1e8] sm:$0xff]   ;;  %v2157_v53 = vld [vmem:[%s2759_s1 + $0x1e0] sm:$0xff]  }
  0x11   :  { %1923 = vmatpush3.bf16.msra.mxu1 %v2127_v15  ;;  %1896 = vmatprep.subr.bf16.mxu0 %v2128_v16  ;;  %v2154_v50 = vld [vmem:[%s2759_s1 + $0x128] sm:$0xff]   ;;  %v2158_v54 = vld [vmem:[%s2759_s1 + $0x120] sm:$0xff]   ;;  %v2160_v56 = vld [vmem:[%s2759_s1 + $0x158] sm:$0xff]  }
  0x12   :  { %1924 = vmatprep.subr.bf16.mxu1 %v2129_v17  ;;  %1266 = vmatprep.mubr.bf16.mxu0 %v1710_v36  ;;  %v2155_v51 = vld [vmem:[%s2759_s1 + $0x1a8] sm:$0xff]   ;;  %v2159_v55 = vld [vmem:[%s2759_s1 + $0x1a0] sm:$0xff]   ;;  %v2161_v57 = vld [vmem:[%s2759_s1 + $0x1d8] sm:$0xff]  }
  0x13   :  { %1315 = vmatprep.mubr.bf16.mxu1 %v1712_v39  ;;  %v2162_v58 = vld [vmem:[%s2759_s1 + $0x118] sm:$0xff]   ;;  %v34_v60 = vld [vmem:[%s2760_s0 + $0x80] sm:$0xff]  ;;  %v35_v63 = vld [vmem:[%s2760_s0 + $0x88] sm:$0xff] }
  0x14   :  { %1897 = vmatpush3.bf16.msra.mxu0 %v2130_v18  ;;  %v2163_v59 = vld [vmem:[%s2759_s1 + $0x198] sm:$0xff]   ;;  %v42_v61 = vld [vmem:[%s2760_s0 + $0xc0] sm:$0xff]  ;;  %v43_v0 = vld [vmem:[%s2760_s0 + $0xc8] sm:$0xff] }
  0x15   :  { %1925 = vmatpush3.bf16.msra.mxu1 %v2131_v19  ;;  %1898 = vmatprep.subr.bf16.mxu0 %v2132_v20  ;;  %v1726_v62 = vcombine.high %v34_v60, %v42_v61  ;;  %v1725_v1 = vcombine.low %v34_v60, %v42_v61  ;;  %v1728_v2 = vcombine.high %v35_v63, %v43_v0  ;;  %v2164_v4 = vld [vmem:[%s2759_s1 + $0x150] sm:$0xff]   ;;  %v2168_v8 = vld [vmem:[%s2759_s1 + $0x148] sm:$0xff]   ;;  %v2172_v12 = vld [vmem:[%s2759_s1 + $0x140] sm:$0xff]  }
  0x16   :  { %1926 = vmatprep.subr.bf16.mxu1 %v2133_v21  ;;  %v1727_v3 = vcombine.low %v35_v63, %v43_v0  ;;  %v2165_v5 = vld [vmem:[%s2759_s1 + $0x1d0] sm:$0xff]   ;;  %v2169_v9 = vld [vmem:[%s2759_s1 + $0x1c8] sm:$0xff]   ;;  %v2173_v13 = vld [vmem:[%s2759_s1 + $0x1c0] sm:$0xff]  }
  0x17   :  { %v2166_v6 = vld [vmem:[%s2759_s1 + $0x110] sm:$0xff]   ;;  %v2170_v10 = vld [vmem:[%s2759_s1 + $0x108] sm:$0xff]   ;;  %v2174_v14 = vld [vmem:[%s2759_s1 + $0x100] sm:$0xff]  }
  0x18   :  { %1899 = vmatpush3.bf16.msra.mxu0 %v2134_v22  ;;  %v2167_v7 = vld [vmem:[%s2759_s1 + $0x190] sm:$0xff]   ;;  %v2171_v11 = vld [vmem:[%s2759_s1 + $0x188] sm:$0xff]   ;;  %v2175_v15 = vld [vmem:[%s2759_s1 + $0x180] sm:$0xff]  }
  0x19   :  { %1927 = vmatpush3.bf16.msra.mxu1 %v2135_v23  ;;  %1900 = vmatprep.subr.bf16.mxu0 %v2136_v24  ;;  %v20_v16 = vld [vmem:[%s2760_s0 + $0x10] sm:$0xff]  ;;  %v21_v18 = vld [vmem:[%s2760_s0 + $0x18] sm:$0xff]  ;;  %v2184_v36 = vld [vmem:[%s2759_s1 + $0x268] sm:$0xff]  }
  0x1a   :  { %1928 = vmatprep.subr.bf16.mxu1 %v2137_v25  ;;  %v28_v17 = vld [vmem:[%s2760_s0 + $0x50] sm:$0xff]  ;;  %v29_v19 = vld [vmem:[%s2760_s0 + $0x58] sm:$0xff]  ;;  %v2185_v37 = vld [vmem:[%s2759_s1 + $0x2e8] sm:$0xff]  }
  0x1b   :  { %v1713_v20 = vcombine.low %v20_v16, %v28_v17  ;;  %v1714_v21 = vcombine.high %v20_v16, %v28_v17  ;;  %v1715_v22 = vcombine.low %v21_v18, %v29_v19  ;;  %v1716_v23 = vcombine.high %v21_v18, %v29_v19  ;;  %v2176_v24 = vld [vmem:[%s2759_s1 + $0x278] sm:$0xff]   ;;  %v36_v32 = vld [vmem:[%s2760_s0 + $0x90] sm:$0xff]  ;;  %v2204_v60 = vld [vmem:[%s2759_s1 + $0x240] sm:$0xff]  }
  0x1c   :  { %1901 = vmatpush3.bf16.msra.mxu0 %v2138_v26  ;;  %v2177_v25 = vld [vmem:[%s2759_s1 + $0x2f8] sm:$0xff]   ;;  %v44_v33 = vld [vmem:[%s2760_s0 + $0xd0] sm:$0xff]  ;;  %v2205_v61 = vld [vmem:[%s2759_s1 + $0x2c0] sm:$0xff]  }
  0x1d   :  { %1929 = vmatpush3.bf16.msra.mxu1 %v2139_v27  ;;  %1902 = vmatprep.subr.bf16.mxu0 %v2140_v28  ;;  %v2178_v26 = vld [vmem:[%s2759_s1 + $0x238] sm:$0xff]   ;;  %v2180_v28 = vld [vmem:[%s2759_s1 + $0x270] sm:$0xff]   ;;  %v1730_v34 = vcombine.high %v36_v32, %v44_v33  ;;  %v2207_v63 = vld [vmem:[%s2759_s1 + $0x280] sm:$0xff]  }
  0x1e   :  { %1930 = vmatprep.subr.bf16.mxu1 %v2141_v29  ;;  %v2179_v27 = vld [vmem:[%s2759_s1 + $0x2b8] sm:$0xff]   ;;  %v2181_v29 = vld [vmem:[%s2759_s1 + $0x2f0] sm:$0xff]   ;;  %v22_v0 = vld [vmem:[%s2760_s0 + $0x20] sm:$0xff] }
  0x1f   :  { %v45_v39 = vld [vmem:[%s2760_s0 + $0xd8] sm:$0xff]  ;;  %v38_v16 = vld [vmem:[%s2760_s0 + $0xa0] sm:$0xff] }
  0x20   :  { %1903 = vmatpush3.bf16.msra.mxu0 %v2142_v30  ;;  %v2182_v30 = vld [vmem:[%s2759_s1 + $0x230] sm:$0xff]   ;;  %v46_v17 = vld [vmem:[%s2760_s0 + $0xe0] sm:$0xff] }
  0x21   :  { %1931 = vmatpush3.bf16.msra.mxu1 %v2143_v31  ;;  %1944 = vmatprep.subr.bf16.mxu0 %v2144_v40  ;;  %v2183_v31 = vld [vmem:[%s2759_s1 + $0x2b0] sm:$0xff]   ;;  %v1734_v18 = vcombine.high %v38_v16, %v46_v17  ;;  %v1733_v19 = vcombine.low %v38_v16, %v46_v17 }
  0x22   :  { %1972 = vmatprep.subr.bf16.mxu1 %v2145_v41  ;;  %v2186_v41 = vld [vmem:[%s2759_s1 + $0x228] sm:$0xff]  }
  0x23   :  { %1267 = vmatmul.mubr.bf16.vlgmr.msra.gmra.mxu0 %v1709_v35  ;;  %v1729_v35 = vcombine.low %v36_v32, %v44_v33  ;;  %v2224_v32 = vld [vmem:[%s2759_s1 + $0x358] sm:$0xff]  }
  0x24   :  { %1316 = vmatmul.mubr.bf16.vlgmr.msra.gmra.mxu1 %v1711_v38  ;;  %1945 = vmatpush3.bf16.msra.mxu0 %v2146_v42  ;;  %v37_v38 = vld [vmem:[%s2760_s0 + $0x98] sm:$0xff] }
  0x25   :  { %1973 = vmatpush3.bf16.msra.mxu1 %v2147_v43  ;;  %1946 = vmatprep.subr.bf16.mxu0 %v2148_v44  ;;  %v1732_v40 = vcombine.high %v37_v38, %v45_v39  ;;  %v1731_v42 = vcombine.low %v37_v38, %v45_v39  ;;  %v2187_v43 = vld [vmem:[%s2759_s1 + $0x2a8] sm:$0xff]   ;;  %v2188_v44 = vld [vmem:[%s2759_s1 + $0x260] sm:$0xff]   ;;  %v2225_v33 = vld [vmem:[%s2759_s1 + $0x3d8] sm:$0xff]  }
  0x26   :  { %1974 = vmatprep.subr.bf16.mxu1 %v2149_v45  ;;  %1274 = vmatprep.mubr.bf16.mxu0 %v1726_v62  ;;  %v2189_v45 = vld [vmem:[%s2759_s1 + $0x2e0] sm:$0xff]   ;;  %v2230_v38 = vld [vmem:[%s2759_s1 + $0x310] sm:$0xff]  }
  0x27   :  { %1323 = vmatprep.mubr.bf16.mxu1 %v1728_v2  ;;  %v2206_v62 = vld [vmem:[%s2759_s1 + $0x200] sm:$0xff]   ;;  %v2231_v39 = vld [vmem:[%s2759_s1 + $0x390] sm:$0xff]  }
  0x28   :  { %1947 = vmatpush3.bf16.msra.mxu0 %v2150_v46  ;;  %v2190_v46 = vld [vmem:[%s2759_s1 + $0x220] sm:$0xff]  }
  0x29   :  { %1975 = vmatpush3.bf16.msra.mxu1 %v2151_v47  ;;  %1948 = vmatprep.subr.bf16.mxu0 %v2152_v48  ;;  %v2191_v47 = vld [vmem:[%s2759_s1 + $0x2a0] sm:$0xff]   ;;  %v2192_v48 = vld [vmem:[%s2759_s1 + $0x258] sm:$0xff]  }
  0x2a   :  { %1976 = vmatprep.subr.bf16.mxu1 %v2153_v49  ;;  %v2193_v49 = vld [vmem:[%s2759_s1 + $0x2d8] sm:$0xff]  }
  0x2b   :  { %1275 = vmatmul.mubr.bf16.gmra.mxu0 %v1725_v1  ;;  %v30_v1 = vld [vmem:[%s2760_s0 + $0x60] sm:$0xff] }
  0x2c   :  { %1949 = vmatpush3.bf16.msra.mxu0 %v2154_v50  ;;  %1324 = vmatmul.mubr.bf16.gmra.mxu1 %v1727_v3  ;;  %v2194_v50 = vld [vmem:[%s2759_s1 + $0x218] sm:$0xff]   ;;  %v1717_v2 = vcombine.low %v22_v0, %v30_v1  ;;  %v1718_v3 = vcombine.high %v22_v0, %v30_v1 }
  0x2d   :  { %1977 = vmatpush3.bf16.msra.mxu1 %v2155_v51  ;;  %1950 = vmatprep.subr.bf16.mxu0 %v2156_v52  ;;  %v2195_v51 = vld [vmem:[%s2759_s1 + $0x298] sm:$0xff]   ;;  %v2196_v52 = vld [vmem:[%s2759_s1 + $0x250] sm:$0xff]  }
  0x2e   :  { %1978 = vmatprep.subr.bf16.mxu1 %v2157_v53  ;;  %1364 = vmatprep.mubr.bf16.mxu0 %v1714_v21  ;;  %v2197_v53 = vld [vmem:[%s2759_s1 + $0x2d0] sm:$0xff]   ;;  %v2217_v21 = vld [vmem:[%s2759_s1 + $0x3e8] sm:$0xff]  }
  0x2f   :  { %1413 = vmatprep.mubr.bf16.mxu1 %v1716_v23  ;;  %v47_v23 = vld [vmem:[%s2760_s0 + $0xe8] sm:$0xff] }
  0x30   :  { %1951 = vmatpush3.bf16.msra.mxu0 %v2158_v54  ;;  %v2198_v54 = vld [vmem:[%s2759_s1 + $0x210] sm:$0xff]  }
  0x31   :  { %1979 = vmatpush3.bf16.msra.mxu1 %v2159_v55  ;;  %1952 = vmatprep.subr.bf16.mxu0 %v2160_v56  ;;  %v2199_v55 = vld [vmem:[%s2759_s1 + $0x290] sm:$0xff]   ;;  %v2200_v56 = vld [vmem:[%s2759_s1 + $0x248] sm:$0xff]  }
  0x32   :  { %1980 = vmatprep.subr.bf16.mxu1 %v2161_v57  ;;  %v2201_v57 = vld [vmem:[%s2759_s1 + $0x2c8] sm:$0xff]  }
  0x34   :  { %1953 = vmatpush3.bf16.msra.mxu0 %v2162_v58  ;;  %v2202_v58 = vld [vmem:[%s2759_s1 + $0x208] sm:$0xff]  }
  0x35   :  { %1981 = vmatpush3.bf16.msra.mxu1 %v2163_v59  ;;  %1954 = vmatprep.subr.bf16.mxu0 %v2164_v4  ;;  %v2203_v59 = vld [vmem:[%s2759_s1 + $0x288] sm:$0xff]  }
  0x36   :  { %1982 = vmatprep.subr.bf16.mxu1 %v2165_v5  ;;  %v23_v4 = vld [vmem:[%s2760_s0 + $0x28] sm:$0xff] }
  0x37   :  { %v31_v5 = vld [vmem:[%s2760_s0 + $0x68] sm:$0xff] }
  0x38   :  { %1955 = vmatpush3.bf16.msra.mxu0 %v2166_v6  ;;  %v1719_v6 = vcombine.low %v23_v4, %v31_v5 }
  0x39   :  { %1983 = vmatpush3.bf16.msra.mxu1 %v2167_v7  ;;  %1956 = vmatprep.subr.bf16.mxu0 %v2168_v8  ;;  %v1720_v7 = vcombine.high %v23_v4, %v31_v5  ;;  %v2208_v8 = vld [vmem:[%s2759_s1 + $0x378] sm:$0xff]  }
  0x3a   :  { %1984 = vmatprep.subr.bf16.mxu1 %v2169_v9  ;;  %v2209_v9 = vld [vmem:[%s2759_s1 + $0x3f8] sm:$0xff]  }
  0x3c   :  { %1957 = vmatpush3.bf16.msra.mxu0 %v2170_v10  ;;  %v2210_v10 = vld [vmem:[%s2759_s1 + $0x338] sm:$0xff]  }
  0x3d   :  { %1985 = vmatpush3.bf16.msra.mxu1 %v2171_v11  ;;  %1958 = vmatprep.subr.bf16.mxu0 %v2172_v12  ;;  %v2211_v11 = vld [vmem:[%s2759_s1 + $0x3b8] sm:$0xff]   ;;  %v2212_v12 = vld [vmem:[%s2759_s1 + $0x370] sm:$0xff]  }
  0x3e   :  { %1986 = vmatprep.subr.bf16.mxu1 %v2173_v13  ;;  %v2213_v13 = vld [vmem:[%s2759_s1 + $0x3f0] sm:$0xff]  }
  0x40   :  { %1959 = vmatpush3.bf16.msra.mxu0 %v2174_v14  ;;  %v2214_v14 = vld [vmem:[%s2759_s1 + $0x330] sm:$0xff]  }
  0x41   :  { %1987 = vmatpush3.bf16.msra.mxu1 %v2175_v15  ;;  %2000 = vmatprep.subr.bf16.mxu0 %v2176_v24  ;;  %v2215_v15 = vld [vmem:[%s2759_s1 + $0x3b0] sm:$0xff]  }
  0x42   :  { %2028 = vmatprep.subr.bf16.mxu1 %v2177_v25  ;;  %v2218_v25 = vld [vmem:[%s2759_s1 + $0x328] sm:$0xff]  }
  0x43   :  { %1365 = vmatmul.mubr.bf16.vlgmr.msra.gmra.mxu0 %v1713_v20  ;;  %v2216_v20 = vld [vmem:[%s2759_s1 + $0x368] sm:$0xff]  }
  0x44   :  { %1414 = vmatmul.mubr.bf16.vlgmr.msra.gmra.mxu1 %v1715_v22  ;;  %2001 = vmatpush3.bf16.msra.mxu0 %v2178_v26  ;;  %v39_v22 = vld [vmem:[%s2760_s0 + $0xa8] sm:$0xff] }
  0x45   :  { %2029 = vmatpush3.bf16.msra.mxu1 %v2179_v27  ;;  %2002 = vmatprep.subr.bf16.mxu0 %v2180_v28  ;;  %v1736_v24 = vcombine.high %v39_v22, %v47_v23  ;;  %v1735_v26 = vcombine.low %v39_v22, %v47_v23  ;;  %v2219_v27 = vld [vmem:[%s2759_s1 + $0x3a8] sm:$0xff]   ;;  %v2220_v28 = vld [vmem:[%s2759_s1 + $0x360] sm:$0xff]  }
  0x46   :  { %2030 = vmatprep.subr.bf16.mxu1 %v2181_v29  ;;  %1372 = vmatprep.mubr.bf16.mxu0 %v1730_v34  ;;  %v2221_v29 = vld [vmem:[%s2759_s1 + $0x3e0] sm:$0xff]   ;;  %v2226_v34 = vld [vmem:[%s2759_s1 + $0x318] sm:$0xff]  }
  0x47   :  { %1421 = vmatprep.mubr.bf16.mxu1 %v1732_v40  ;;  %v2232_v40 = vld [vmem:[%s2759_s1 + $0x348] sm:$0xff]  }
  0x48   :  { %2003 = vmatpush3.bf16.msra.mxu0 %v2182_v30  ;;  %v2222_v30 = vld [vmem:[%s2759_s1 + $0x320] sm:$0xff]  }
  0x49   :  { %2031 = vmatpush3.bf16.msra.mxu1 %v2183_v31  ;;  %2004 = vmatprep.subr.bf16.mxu0 %v2184_v36  ;;  %v2223_v31 = vld [vmem:[%s2759_s1 + $0x3a0] sm:$0xff]   ;;  %v2228_v36 = vld [vmem:[%s2759_s1 + $0x350] sm:$0xff]  }
  0x4a   :  { %2032 = vmatprep.subr.bf16.mxu1 %v2185_v37  ;;  %v2229_v37 = vld [vmem:[%s2759_s1 + $0x3d0] sm:$0xff]  }
  0x4b   :  { %1373 = vmatmul.mubr.bf16.gmra.mxu0 %v1729_v35  ;;  %v2227_v35 = vld [vmem:[%s2759_s1 + $0x398] sm:$0xff]  }
  0x4c   :  { %2005 = vmatpush3.bf16.msra.mxu0 %v2186_v41  ;;  %1422 = vmatmul.mubr.bf16.gmra.mxu1 %v1731_v42  ;;  %v2233_v41 = vld [vmem:[%s2759_s1 + $0x3c8] sm:$0xff]  }
  0x4d   :  { %2033 = vmatpush3.bf16.msra.mxu1 %v2187_v43  ;;  %2006 = vmatprep.subr.bf16.mxu0 %v2188_v44  ;;  %v2234_v42 = vld [vmem:[%s2759_s1 + $0x308] sm:$0xff]   ;;  %v2236_v44 = vld [vmem:[%s2759_s1 + $0x340] sm:$0xff]  }
  0x4e   :  { %2034 = vmatprep.subr.bf16.mxu1 %v2189_v45  ;;  %1462 = vmatprep.mubr.bf16.mxu0 %v1718_v3  ;;  %v2235_v43 = vld [vmem:[%s2759_s1 + $0x388] sm:$0xff]   ;;  %v2237_v45 = vld [vmem:[%s2759_s1 + $0x3c0] sm:$0xff]  }
  0x4f   :  { %1511 = vmatprep.mubr.bf16.mxu1 %v1720_v7 }
  0x50   :  { %2007 = vmatpush3.bf16.msra.mxu0 %v2190_v46  ;;  %v2238_v46 = vld [vmem:[%s2759_s1 + $0x300] sm:$0xff]  }
  0x51   :  { %2035 = vmatpush3.bf16.msra.mxu1 %v2191_v47  ;;  %2008 = vmatprep.subr.bf16.mxu0 %v2192_v48  ;;  %v2239_v47 = vld [vmem:[%s2759_s1 + $0x380] sm:$0xff]   ;;  %v24_v48 = vld [vmem:[%s2760_s0 + $0x30] sm:$0xff] }
  0x52   :  { %2036 = vmatprep.subr.bf16.mxu1 %v2193_v49  ;;  %v32_v49 = vld [vmem:[%s2760_s0 + $0x70] sm:$0xff] }
  0x54   :  { %2009 = vmatpush3.bf16.msra.mxu0 %v2194_v50  ;;  %v25_v50 = vld [vmem:[%s2760_s0 + $0x38] sm:$0xff] }
  0x55   :  { %2037 = vmatpush3.bf16.msra.mxu1 %v2195_v51  ;;  %2010 = vmatprep.subr.bf16.mxu0 %v2196_v52  ;;  %v1721_v51 = vcombine.low %v24_v48, %v32_v49  ;;  %v1722_v52 = vcombine.high %v24_v48, %v32_v49 }
  0x56   :  { %2038 = vmatprep.subr.bf16.mxu1 %v2197_v53  ;;  %v33_v53 = vld [vmem:[%s2760_s0 + $0x78] sm:$0xff] }
  0x58   :  { %2011 = vmatpush3.bf16.msra.mxu0 %v2198_v54  ;;  %v40_v54 = vld [vmem:[%s2760_s0 + $0xb0] sm:$0xff] }
  0x59   :  { %2039 = vmatpush3.bf16.msra.mxu1 %v2199_v55  ;;  %2012 = vmatprep.subr.bf16.mxu0 %v2200_v56  ;;  %v48_v55 = vld [vmem:[%s2760_s0 + $0xf0] sm:$0xff]  ;;  %v1723_v56 = vcombine.low %v25_v50, %v33_v53 }
  0x5a   :  { %2040 = vmatprep.subr.bf16.mxu1 %v2201_v57  ;;  %v1724_v57 = vcombine.high %v25_v50, %v33_v53 }
  0x5c   :  { %2013 = vmatpush3.bf16.msra.mxu0 %v2202_v58  ;;  %v1738_v58 = vcombine.high %v40_v54, %v48_v55 }
  0x5d   :  { %2041 = vmatpush3.bf16.msra.mxu1 %v2203_v59  ;;  %2014 = vmatprep.subr.bf16.mxu0 %v2204_v60  ;;  %v41_v59 = vld [vmem:[%s2760_s0 + $0xb8] sm:$0xff] }
  0x5e   :  { %2042 = vmatprep.subr.bf16.mxu1 %v2205_v61  ;;  %v49_v60 = vld [vmem:[%s2760_s0 + $0xf8] sm:$0xff] }
  0x5f   :  { %v1740_v61 = vcombine.high %v41_v59, %v49_v60 }
  0x60   :  { %2015 = vmatpush3.bf16.msra.mxu0 %v2206_v62  ;;  %v1737_v62 = vcombine.low %v40_v54, %v48_v55 }
  0x61   :  { %2043 = vmatpush3.bf16.msra.mxu1 %v2207_v63  ;;  %2056 = vmatprep.subr.bf16.mxu0 %v2208_v8  ;;  %v1739_v63 = vcombine.low %v41_v59, %v49_v60 }
  0x62   :  { %2084 = vmatprep.subr.bf16.mxu1 %v2209_v9 }
  0x63   :  { %1463 = vmatmul.mubr.bf16.vlgmr.msra.gmra.mxu0 %v1717_v2 }
  0x64   :  { %1512 = vmatmul.mubr.bf16.vlgmr.msra.gmra.mxu1 %v1719_v6  ;;  %2057 = vmatpush3.bf16.msra.mxu0 %v2210_v10 }
  0x65   :  { %2085 = vmatpush3.bf16.msra.mxu1 %v2211_v11  ;;  %2058 = vmatprep.subr.bf16.mxu0 %v2212_v12 }
  0x66   :  { %2086 = vmatprep.subr.bf16.mxu1 %v2213_v13  ;;  %1470 = vmatprep.mubr.bf16.mxu0 %v1734_v18 }
  0x67   :  { %1519 = vmatprep.mubr.bf16.mxu1 %v1736_v24 }
  0x68   :  { %2059 = vmatpush3.bf16.msra.mxu0 %v2214_v14 }
  0x69   :  { %2087 = vmatpush3.bf16.msra.mxu1 %v2215_v15  ;;  %2060 = vmatprep.subr.bf16.mxu0 %v2216_v20 }
  0x6a   :  { %2088 = vmatprep.subr.bf16.mxu1 %v2217_v21 }
  0x6b   :  { %1471 = vmatmul.mubr.bf16.gmra.mxu0 %v1733_v19 }
  0x6c   :  { %2061 = vmatpush3.bf16.msra.mxu0 %v2218_v25  ;;  %1520 = vmatmul.mubr.bf16.gmra.mxu1 %v1735_v26 }
  0x6d   :  { %2089 = vmatpush3.bf16.msra.mxu1 %v2219_v27  ;;  %2062 = vmatprep.subr.bf16.mxu0 %v2220_v28 }
  0x6e   :  { %2090 = vmatprep.subr.bf16.mxu1 %v2221_v29  ;;  %1560 = vmatprep.mubr.bf16.mxu0 %v1722_v52 }
  0x6f   :  { %1609 = vmatprep.mubr.bf16.mxu1 %v1724_v57 }
  0x70   :  { %2063 = vmatpush3.bf16.msra.mxu0 %v2222_v30 }
  0x71   :  { %2091 = vmatpush3.bf16.msra.mxu1 %v2223_v31  ;;  %2064 = vmatprep.subr.bf16.mxu0 %v2224_v32 }
  0x72   :  { %2092 = vmatprep.subr.bf16.mxu1 %v2225_v33 }
  0x74   :  { %2065 = vmatpush3.bf16.msra.mxu0 %v2226_v34 }
  0x75   :  { %2093 = vmatpush3.bf16.msra.mxu1 %v2227_v35  ;;  %2066 = vmatprep.subr.bf16.mxu0 %v2228_v36 }
  0x76   :  { %2094 = vmatprep.subr.bf16.mxu1 %v2229_v37 }
  0x78   :  { %2067 = vmatpush3.bf16.msra.mxu0 %v2230_v38 }
  0x79   :  { %2095 = vmatpush3.bf16.msra.mxu1 %v2231_v39  ;;  %2068 = vmatprep.subr.bf16.mxu0 %v2232_v40 }
  0x7a   :  { %2096 = vmatprep.subr.bf16.mxu1 %v2233_v41 }
  0x7c   :  { %2069 = vmatpush3.bf16.msra.mxu0 %v2234_v42 }
  0x7d   :  { %2097 = vmatpush3.bf16.msra.mxu1 %v2235_v43  ;;  %2070 = vmatprep.subr.bf16.mxu0 %v2236_v44 }
  0x7e   :  { %2098 = vmatprep.subr.bf16.mxu1 %v2237_v45 }
  0x80   :  { %2071 = vmatpush3.bf16.msra.mxu0 %v2238_v46 }
  0x81   :  { %2099 = vmatpush3.bf16.msra.mxu1 %v2239_v47 }
  0x83   :  { %1561 = vmatmul.mubr.bf16.vlgmr.msra.gmra.mxu0 %v1721_v51 }
  0x84   :  { %1610 = vmatmul.mubr.bf16.vlgmr.msra.gmra.mxu1 %v1723_v56  ;;  %1568 = vmatprep.mubr.bf16.mxu0 %v1738_v58 }
  0x85   :  { %1617 = vmatprep.mubr.bf16.mxu1 %v1740_v61 }
  0x8b   :  { %1569 = vmatmul.mubr.bf16.gmra.mxu0 %v1737_v62 }
  0x8c   :  { %1618 = vmatmul.mubr.bf16.gmra.mxu1 %v1739_v63 }
  0xe3   :  { %v1904_v0 = vpop.f32.mrf.mxu0 }
  0xe4   :  { %v1932_v2 = vpop.f32.mrf.mxu1 }
  0xe5   :  { %v1905_v1 = vpop.f32.mrf.mxu0 }
  0xe6   :  { %v1933_v4 = vpop.f32.mrf.mxu1  ;;  %v1906_v46 = vadd.f32 %v1905_v1, %v1904_v0 }
  0xe7   :  { %v1907_v3 = vpop.f32.mrf.mxu0  ;;  %v1934_v47 = vadd.f32 %v1933_v4, %v1932_v2 }
  0xe8   :  { %v1935_v6 = vpop.f32.mrf.mxu1 }
  0xe9   :  { %v1908_v5 = vpop.f32.mrf.mxu0  ;;  %v1318_v56 = vadd.f32 %v1934_v47, %v1906_v46 }
  0xea   :  { %v1936_v8 = vpop.f32.mrf.mxu1  ;;  %v1909_v43 = vadd.f32 %v1908_v5, %v1907_v3 }
  0xeb   :  { %v1910_v7 = vpop.f32.mrf.mxu0  ;;  %v1937_v44 = vadd.f32 %v1936_v8, %v1935_v6 }
  0xec   :  { %v1938_v10 = vpop.f32.mrf.mxu1 }
  0xed   :  { %v1911_v9 = vpop.f32.mrf.mxu0  ;;  %v1321_v52 = vadd.f32 %v1937_v44, %v1909_v43 }
  0xee   :  { %v1939_v12 = vpop.f32.mrf.mxu1  ;;  %v1912_v49 = vadd.f32 %v1911_v9, %v1910_v7 }
  0xef   :  { %v1913_v11 = vpop.f32.mrf.mxu0  ;;  %v1940_v50 = vadd.f32 %v1939_v12, %v1938_v10 }
  0xf0   :  { %v1941_v14 = vpop.f32.mrf.mxu1 }
  0xf1   :  { %v1914_v13 = vpop.f32.mrf.mxu0  ;;  %v1326_v58 = vadd.f32 %v1940_v50, %v1912_v49 }
  0xf2   :  { %v1942_v16 = vpop.f32.mrf.mxu1  ;;  %v1915_v59 = vadd.f32 %v1914_v13, %v1913_v11 }
  0xf3   :  { %v1943_v60 = vadd.f32 %v1942_v16, %v1941_v14 }
  0xf5   :  { %v1329_v10 = vadd.f32 %v1943_v60, %v1915_v59 }
 0x103   :  { %v1960_v15 = vpop.f32.mrf.mxu0 }
 0x104   :  { %v1988_v18 = vpop.f32.mrf.mxu1 }
 0x105   :  { %v1961_v17 = vpop.f32.mrf.mxu0 }
 0x106   :  { %v1989_v20 = vpop.f32.mrf.mxu1  ;;  %v1962_v53 = vadd.f32 %v1961_v17, %v1960_v15 }
 0x107   :  { %v1963_v19 = vpop.f32.mrf.mxu0  ;;  %v1990_v63 = vadd.f32 %v1989_v20, %v1988_v18 }
 0x108   :  { %v1991_v22 = vpop.f32.mrf.mxu1  ;;  %v1367_v62 = vadd.f32 %v1962_v53, %v1318_v56 }
 0x109   :  { %v1964_v21 = vpop.f32.mrf.mxu0 }
 0x10a   :  { %v1992_v24 = vpop.f32.mrf.mxu1  ;;  %v1965_v48 = vadd.f32 %v1964_v21, %v1963_v19  ;;  %v1416_v17 = vadd.f32 %v1990_v63, %v1367_v62 }
 0x10b   :  { %v1966_v23 = vpop.f32.mrf.mxu0  ;;  %v1993_v3 = vadd.f32 %v1992_v24, %v1991_v22 }
 0x10c   :  { %v1994_v25 = vpop.f32.mrf.mxu1  ;;  %v1370_v57 = vadd.f32 %v1965_v48, %v1321_v52 }
 0x10d   :  { %v1967_v26 = vpop.f32.mrf.mxu0 }
 0x10e   :  { %v1995_v27 = vpop.f32.mrf.mxu1  ;;  %v1968_v55 = vadd.f32 %v1967_v26, %v1966_v23  ;;  %v1419_v7 = vadd.f32 %v1993_v3, %v1370_v57 }
 0x10f   :  { %v1969_v28 = vpop.f32.mrf.mxu0  ;;  %v1996_v2 = vadd.f32 %v1995_v27, %v1994_v25 }
 0x110   :  { %v1997_v29 = vpop.f32.mrf.mxu1  ;;  %v1375_v1 = vadd.f32 %v1968_v55, %v1326_v58 }
 0x111   :  { %v1970_v30 = vpop.f32.mrf.mxu0 }
 0x112   :  { %v1998_v32 = vpop.f32.mrf.mxu1  ;;  %v1971_v4 = vadd.f32 %v1970_v30, %v1969_v28  ;;  %v1424_v13 = vadd.f32 %v1996_v2, %v1375_v1 }
 0x113   :  { %v1999_v16 = vadd.f32 %v1998_v32, %v1997_v29 }
 0x114   :  { %v1378_v14 = vadd.f32 %v1971_v4, %v1329_v10 }
 0x123   :  { %v2016_v31 = vpop.f32.mrf.mxu0 }
 0x124   :  { %v2044_v33 = vpop.f32.mrf.mxu1 }
 0x125   :  { %v2017_v34 = vpop.f32.mrf.mxu0 }
 0x126   :  { %v2045_v35 = vpop.f32.mrf.mxu1  ;;  %v2018_v8 = vadd.f32 %v2017_v34, %v2016_v31 }
 0x127   :  { %v2019_v36 = vpop.f32.mrf.mxu0  ;;  %v2046_v21 = vadd.f32 %v2045_v35, %v2044_v33 }
 0x128   :  { %v2047_v37 = vpop.f32.mrf.mxu1  ;;  %v1465_v20 = vadd.f32 %v2018_v8, %v1416_v17 }
 0x129   :  { %v2020_v38 = vpop.f32.mrf.mxu0 }
 0x12a   :  { %v2048_v39 = vpop.f32.mrf.mxu1  ;;  %v2021_v5 = vadd.f32 %v2020_v38, %v2019_v36  ;;  %v1427_v36 = vadd.f32 %v1999_v16, %v1378_v14 }
 0x12b   :  { %v2022_v40 = vpop.f32.mrf.mxu0  ;;  %v2049_v22 = vadd.f32 %v2048_v39, %v2047_v37 }
 0x12c   :  { %v2050_v41 = vpop.f32.mrf.mxu1  ;;  %v1468_v19 = vadd.f32 %v2021_v5, %v1419_v7 }
 0x12d   :  { %v2023_v42 = vpop.f32.mrf.mxu0 }
 0x12e   :  { %v2051_v45 = vpop.f32.mrf.mxu1  ;;  %v2024_v12 = vadd.f32 %v2023_v42, %v2022_v40  ;;  %v1517_v28 = vadd.f32 %v2049_v22, %v1468_v19  ;;  %v1514_v40 = vadd.f32 %v2046_v21, %v1465_v20 }
 0x12f   :  { %v2025_v51 = vpop.f32.mrf.mxu0  ;;  %v2052_v25 = vadd.f32 %v2051_v45, %v2050_v41 }
 0x130   :  { %v2053_v54 = vpop.f32.mrf.mxu1  ;;  %v1473_v24 = vadd.f32 %v2024_v12, %v1424_v13 }
 0x131   :  { %v2026_v61 = vpop.f32.mrf.mxu0 }
 0x132   :  { %v2054_v0 = vpop.f32.mrf.mxu1  ;;  %v2027_v26 = vadd.f32 %v2026_v61, %v2025_v51  ;;  %v1522_v44 = vadd.f32 %v2052_v25, %v1473_v24  ;;  %v1662_v25 = vlaneseq }
 0x133   :  { %v2055_v46 = vadd.f32 %v2054_v0, %v2053_v54 }
 0x134   :  { %v1476_v29 = vadd.f32 %v2027_v26, %v1427_v36  ;;  %v1663_v26 = vshrl.u32 %v1662_v25, 7 }
 0x136   :  { %v1525_v52 = vadd.f32 %v2055_v46, %v1476_v29 }
 0x143   :  { %v2072_v6 = vpop.f32.mrf.mxu0 }
 0x144   :  { %v2100_v9 = vpop.f32.mrf.mxu1 }
 0x145   :  { %v2073_v15 = vpop.f32.mrf.mxu0 }
 0x146   :  { %v2101_v11 = vpop.f32.mrf.mxu1  ;;  %v2074_v30 = vadd.f32 %v2073_v15, %v2072_v6 }
 0x147   :  { %v2075_v18 = vpop.f32.mrf.mxu0  ;;  %v2102_v45 = vadd.f32 %v2101_v11, %v2100_v9 }
 0x148   :  { %v2103_v23 = vpop.f32.mrf.mxu1  ;;  %v1563_v33 = vadd.f32 %v2074_v30, %v1514_v40 }
 0x149   :  { %v2076_v27 = vpop.f32.mrf.mxu0 }
 0x14a   :  { %v2077_v31 = vadd.f32 %v2076_v27, %v2075_v18  ;;  %v2104_v34 = vpop.f32.mrf.mxu1  ;;  %v1612_v53 = vadd.f32 %v2102_v45, %v1563_v33  ;;  %v1656_v27 = vld [vmem:[%s2761_s2] sm:$0x1] }
 0x14b   :  { %v2078_v38 = vpop.f32.mrf.mxu0  ;;  %v2105_v35 = vadd.f32 %v2104_v34, %v2103_v23  ;;  %v1658_v34 = vld [vmem:[%s2762_s3] sm:$0x1] }
 0x14c   :  { %v1566_v42 = vadd.f32 %v2077_v31, %v1517_v28  ;;  %v2106_v43 = vpop.f32.mrf.mxu1  ;;  %v1664_v28 = vsub.s32 0, %v1663_v26 }
 0x14d   :  { %v2079_v32 = vpop.f32.mrf.mxu0 }
 0x14e   :  { %v2080_v37 = vadd.f32 %v2079_v32, %v2078_v38  ;;  %v2107_v39 = vpop.f32.mrf.mxu1  ;;  %v1615_v47 = vadd.f32 %v2105_v35, %v1566_v42 }
 0x14f   :  { %v2081_v41 = vpop.f32.mrf.mxu0  ;;  %v2108_v49 = vadd.f32 %v2107_v39, %v2106_v43 }
 0x150   :  { %v1571_v48 = vadd.f32 %v2080_v37, %v1522_v44  ;;  %v2109_v50 = vpop.f32.mrf.mxu1  ;;  %v1626_v58 = vadd.f32 %v1615_v47, %v1612_v53 }
 0x151   :  { %v2082_v51 = vpop.f32.mrf.mxu0 }
 0x152   :  { %v1620_v55 = vadd.f32 %v2108_v49, %v1571_v48  ;;  %v2083_v56 = vadd.f32 %v2082_v51, %v2081_v41  ;;  %v2110_v57 = vpop.f32.mrf.mxu1 }
 0x153   :  { %v2111_v60 = vadd.f32 %v2110_v57, %v2109_v50 }
 0x154   :  { %v1574_v59 = vadd.f32 %v2083_v56, %v1525_v52  ;;  %v1627_v54 = vadd.f32 %v1626_v58, %v1620_v55 }
 0x156   :  { %v1623_v61 = vadd.f32 %v2111_v60, %v1574_v59 }
 0x158   :  { %v1628_v62 = vadd.f32 %v1627_v54, %v1623_v61 }
 0x15a   :  { %v1629_v63 = vrot.slane %v1628_v62, 4 }
 0x15c   :  { %v1630_v3 = vadd.f32 %v1629_v63, %v1628_v62 }
 0x15e   :  { %v1631_v5 = vrot.slane %v1630_v3, 2 }
 0x160   :  { %v1632_v0 = vadd.f32 %v1631_v5, %v1630_v3 }
 0x162   :  { %v1633_v1 = vrot.slane %v1632_v0, 1 }
 0x164   :  { %v1634_v2 = vadd.f32 %v1633_v1, %v1632_v0 }
 0x166   :  { %v1635_v4 = vmul.f32 0.03125, %v1634_v2 }
 0x168   :  { %v1636_v6 = vsub.f32 %v1612_v53, %v1635_v4  ;;  %v1637_v7 = vsub.f32 %v1615_v47, %v1635_v4  ;;  %v1638_v8 = vsub.f32 %v1620_v55, %v1635_v4  ;;  %v1639_v9 = vsub.f32 %v1623_v61, %v1635_v4 }
 0x16a   :  { %v1640_v10 = vmul.f32 %v1636_v6, %v1636_v6  ;;  %v1641_v12 = vmul.f32 %v1637_v7, %v1637_v7  ;;  %v1642_v15 = vmul.f32 %v1638_v8, %v1638_v8  ;;  %v1643_v19 = vmul.f32 %v1639_v9, %v1639_v9 }
 0x16c   :  { %v1644_v17 = vadd.f32 %v1641_v12, %v1640_v10 }
 0x16e   :  { %v1645_v11 = vadd.f32 %v1644_v17, %v1642_v15 }
 0x170   :  { %v1646_v13 = vadd.f32 %v1645_v11, %v1643_v19 }
 0x172   :  { %v1647_v14 = vrot.slane %v1646_v13, 4 }
 0x174   :  { %v1648_v16 = vadd.f32 %v1647_v14, %v1646_v13 }
 0x176   :  { %v1649_v18 = vrot.slane %v1648_v16, 2 }
 0x178   :  { %v1650_v20 = vadd.f32 %v1649_v18, %v1648_v16 }
 0x17a   :  { %v1651_v21 = vrot.slane %v1650_v20, 1 }
 0x17c   :  { %v1652_v22 = vadd.f32 %v1651_v21, %v1650_v20 }
 0x17e   :  { %v1653_v23 = vmul.f32 0.03125, %v1652_v22 }
 0x180   :  { %v1654_v24 = vadd.f32 1e-05, %v1653_v23 }
 0x182   :  { %2240 = vrsqrt.f32 %v1654_v24 }
 0x18f   :  { %v2241_v30 = vpop.eup %2240 }
 0x190   :  { %v1657_v31 = vmul.f32 %v2241_v30, %v1656_v27 }
 0x192   :  { %v1659_v36 = vmul.f32 %v1657_v31, %v1635_v4  ;;  %v1665_v38 = vrot.slane %v1657_v31, %v1664_v28 }
 0x194   :  { %v1660_v40 = vsub.f32 %v1658_v34, %v1659_v36  ;;  %v1667_v42 = vmul.f32 %v1665_v38, %v1612_v53  ;;  %v1668_v43 = vmul.f32 %v1665_v38, %v1615_v47  ;;  %v1669_v44 = vmul.f32 %v1665_v38, %v1620_v55 }
 0x195   :  { %v1670_v29 = vmul.f32 %v1665_v38, %v1623_v61 }
 0x196   :  { %v1675_v32 = vrot.slane %v1660_v40, %v1664_v28 }
 0x198   :  { %v1677_v46 = vadd.f32 %v1675_v32, %v1667_v42  ;;  %v1678_v33 = vadd.f32 %v1675_v32, %v1668_v43  ;;  %v1679_v35 = vadd.f32 %v1675_v32, %v1669_v44  ;;  %v1680_v37 = vadd.f32 %v1675_v32, %v1670_v29 }
 0x19a   :  { %v1681_v39 = vmax.f32 %v1677_v46, 0.0  ;;  %v1682_v41 = vmax.f32 %v1678_v33, 0.0  ;;  %v1683_v45 = vmax.f32 %v1679_v35, 0.0  ;;  %v1684_v48 = vmax.f32 %v1680_v37, 0.0 }
 0x19c   :  { %v1880_v49 = vpack.c.bf16 %v1682_v41, %v1681_v39  ;;  %v1885_v50 = vpack.c.bf16 %v1684_v48, %v1683_v45 }
 0x19e   :  { %1881 = vst [vmem:[%s2763_s4] sm:$0xff] %v1880_v49   ;;  %1887 = vst [vmem:[%s2763_s4 + $0x8] sm:$0xff] %v1885_v50  }

// kernel: dc_encoder_forward.7
= control target key start
LH: loop header
LB: loop body
LE: loop exit
PB: predicated region body
PF: predicated region fallthrough
CT: control target
= control target key end

     0   :  { %s627_s1 = inlined_call_operand.vmem [shape: bf16[512,128], index: 1, kind: input, shape index: {}]   ;;  %s628_s0 = inlined_call_operand.vmem [shape: bf16[16,512], index: 0, kind: input, shape index: {}]   ;;  %s629_s2 = inlined_call_operand.vmem [shape: f32[16,128], index: 2, kind: output, shape index: {}]  }
   0x1   :  { %v460_v0 = vld [vmem:[%s627_s1 + $0x78] sm:$0xff]   ;;  %v464_v4 = vld [vmem:[%s627_s1 + $0x70] sm:$0xff]   ;;  %v468_v8 = vld [vmem:[%s627_s1 + $0x68] sm:$0xff]  }
   0x2   :  { %v461_v1 = vld [vmem:[%s627_s1 + $0xf8] sm:$0xff]   ;;  %416 = vmatprep.subr.bf16.mxu0 %v460_v0  ;;  %v465_v5 = vld [vmem:[%s627_s1 + $0xf0] sm:$0xff]   ;;  %v469_v9 = vld [vmem:[%s627_s1 + $0xe8] sm:$0xff]  }
   0x3   :  { %v462_v2 = vld [vmem:[%s627_s1 + $0x38] sm:$0xff]   ;;  %438 = vmatprep.subr.bf16.mxu1 %v461_v1  ;;  %v466_v6 = vld [vmem:[%s627_s1 + $0x30] sm:$0xff]   ;;  %v470_v10 = vld [vmem:[%s627_s1 + $0x28] sm:$0xff]  }
   0x4   :  { %v463_v3 = vld [vmem:[%s627_s1 + $0xb8] sm:$0xff]   ;;  %417 = vmatpush3.bf16.msra.mxu0 %v462_v2  ;;  %v467_v7 = vld [vmem:[%s627_s1 + $0xb0] sm:$0xff]   ;;  %v471_v11 = vld [vmem:[%s627_s1 + $0xa8] sm:$0xff]  }
   0x5   :  { %439 = vmatpush3.bf16.msra.mxu1 %v463_v3  ;;  %418 = vmatprep.subr.bf16.mxu0 %v464_v4  ;;  %v472_v12 = vld [vmem:[%s627_s1 + $0x60] sm:$0xff]   ;;  %v476_v16 = vld [vmem:[%s627_s1 + $0x58] sm:$0xff]   ;;  %v480_v20 = vld [vmem:[%s627_s1 + $0x50] sm:$0xff]  }
   0x6   :  { %440 = vmatprep.subr.bf16.mxu1 %v465_v5  ;;  %v473_v13 = vld [vmem:[%s627_s1 + $0xe0] sm:$0xff]   ;;  %v477_v17 = vld [vmem:[%s627_s1 + $0xd8] sm:$0xff]   ;;  %v481_v21 = vld [vmem:[%s627_s1 + $0xd0] sm:$0xff]  }
   0x7   :  { %v474_v14 = vld [vmem:[%s627_s1 + $0x20] sm:$0xff]   ;;  %v478_v18 = vld [vmem:[%s627_s1 + $0x18] sm:$0xff]   ;;  %v482_v22 = vld [vmem:[%s627_s1 + $0x10] sm:$0xff]  }
   0x8   :  { %419 = vmatpush3.bf16.msra.mxu0 %v466_v6  ;;  %v475_v15 = vld [vmem:[%s627_s1 + $0xa0] sm:$0xff]   ;;  %v479_v19 = vld [vmem:[%s627_s1 + $0x98] sm:$0xff]   ;;  %v483_v23 = vld [vmem:[%s627_s1 + $0x90] sm:$0xff]  }
   0x9   :  { %441 = vmatpush3.bf16.msra.mxu1 %v467_v7  ;;  %420 = vmatprep.subr.bf16.mxu0 %v468_v8  ;;  %v484_v24 = vld [vmem:[%s627_s1 + $0x48] sm:$0xff]   ;;  %v488_v28 = vld [vmem:[%s627_s1 + $0x40] sm:$0xff]  }
   0xa   :  { %442 = vmatprep.subr.bf16.mxu1 %v469_v9  ;;  %v485_v25 = vld [vmem:[%s627_s1 + $0xc8] sm:$0xff]   ;;  %v489_v29 = vld [vmem:[%s627_s1 + $0xc0] sm:$0xff]  }
   0xb   :  { %v486_v26 = vld [vmem:[%s627_s1 + $0x8] sm:$0xff]   ;;  %v490_v30 = vld [vmem:[%s627_s1] sm:$0xff]  }
   0xc   :  { %421 = vmatpush3.bf16.msra.mxu0 %v470_v10  ;;  %v487_v27 = vld [vmem:[%s627_s1 + $0x88] sm:$0xff]   ;;  %v491_v31 = vld [vmem:[%s627_s1 + $0x80] sm:$0xff]  }
   0xd   :  { %443 = vmatpush3.bf16.msra.mxu1 %v471_v11  ;;  %422 = vmatprep.subr.bf16.mxu0 %v472_v12  ;;  %v492_v32 = vld [vmem:[%s628_s0] ss:$16 sps:$4 sm:$0xff]   ;;  %v494_v33 = vld [vmem:[%s628_s0 + $0x4] ss:$16 sps:$4 sm:$0xff]   ;;  %v495_v34 = vld [vmem:[%s628_s0 + $0x8] ss:$16 sps:$4 sm:$0xff]  }
   0xe   :  { %444 = vmatprep.subr.bf16.mxu1 %v473_v13  ;;  %v497_v35 = vld [vmem:[%s628_s0 + $0xc] ss:$16 sps:$4 sm:$0xff]   ;;  %324 = vmatprep.mubr.bf16.mxu0 %v494_v33 }
   0xf   :  { %365 = vmatprep.mubr.bf16.mxu1 %v497_v35 }
  0x10   :  { %423 = vmatpush3.bf16.msra.mxu0 %v474_v14 }
  0x11   :  { %445 = vmatpush3.bf16.msra.mxu1 %v475_v15  ;;  %424 = vmatprep.subr.bf16.mxu0 %v476_v16 }
  0x12   :  { %446 = vmatprep.subr.bf16.mxu1 %v477_v17 }
  0x14   :  { %425 = vmatpush3.bf16.msra.mxu0 %v478_v18 }
  0x15   :  { %447 = vmatpush3.bf16.msra.mxu1 %v479_v19  ;;  %426 = vmatprep.subr.bf16.mxu0 %v480_v20 }
  0x16   :  { %448 = vmatprep.subr.bf16.mxu1 %v481_v21 }
  0x18   :  { %427 = vmatpush3.bf16.msra.mxu0 %v482_v22 }
  0x19   :  { %449 = vmatpush3.bf16.msra.mxu1 %v483_v23  ;;  %428 = vmatprep.subr.bf16.mxu0 %v484_v24 }
  0x1a   :  { %450 = vmatprep.subr.bf16.mxu1 %v485_v25 }
  0x1c   :  { %429 = vmatpush3.bf16.msra.mxu0 %v486_v26 }
  0x1d   :  { %451 = vmatpush3.bf16.msra.mxu1 %v487_v27  ;;  %430 = vmatprep.subr.bf16.mxu0 %v488_v28 }
  0x1e   :  { %452 = vmatprep.subr.bf16.mxu1 %v489_v29 }
  0x20   :  { %431 = vmatpush3.bf16.msra.mxu0 %v490_v30 }
  0x21   :  { %453 = vmatpush3.bf16.msra.mxu1 %v491_v31 }
  0x23   :  { %325 = vmatmul.mubr.bf16.vlgmr.msra.gmra.mxu0 %v492_v32 }
  0x24   :  { %366 = vmatmul.mubr.bf16.vlgmr.msra.gmra.mxu1 %v495_v34 }
  0xe3   :  { %v432_v36 = vpop.f32.mrf.mxu0 }
  0xe4   :  { %v454_v37 = vpop.f32.mrf.mxu1 }
  0xe5   :  { %v433_v38 = vpop.f32.mrf.mxu0 }
  0xe6   :  { %v434_v39 = vadd.f32 %v433_v38, %v432_v36  ;;  %v455_v40 = vpop.f32.mrf.mxu1 }
  0xe7   :  { %v456_v41 = vadd.f32 %v455_v40, %v454_v37  ;;  %v435_v42 = vpop.f32.mrf.mxu0 }
  0xe8   :  { %v457_v43 = vpop.f32.mrf.mxu1 }
  0xe9   :  { %v368_v44 = vadd.f32 %v456_v41, %v434_v39  ;;  %v436_v45 = vpop.f32.mrf.mxu0 }
  0xea   :  { %v437_v46 = vadd.f32 %v436_v45, %v435_v42  ;;  %v458_v47 = vpop.f32.mrf.mxu1 }
  0xeb   :  { %374 = vst [vmem:[%s629_s2] sm:$0xff] %v368_v44  ;;  %v459_v48 = vadd.f32 %v458_v47, %v457_v43 }
  0xed   :  { %v371_v49 = vadd.f32 %v459_v48, %v437_v46 }
  0xef   :  { %375 = vst [vmem:[%s629_s2 + $0x8] sm:$0xff] %v371_v49 }

// kernel: dc_encoder_forward.6
= control target key start
LH: loop header
LB: loop body
LE: loop exit
PB: predicated region body
PF: predicated region fallthrough
CT: control target
= control target key end

     0   :  { %s2457_s1 = inlined_call_operand.vmem [shape: bf16[2048,128], index: 1, kind: input, shape index: {}]   ;;  %s2458_s0 = inlined_call_operand.vmem [shape: bf16[16,2048], index: 0, kind: input, shape index: {}]   ;;  %s2459_s2 = inlined_call_operand.vmem [shape: f32[1,128], index: 2, kind: input, shape index: {}]   ;;  %s2460_s3 = inlined_call_operand.vmem [shape: f32[1,128], index: 3, kind: input, shape index: {}]   ;;  %s2461_s4 = inlined_call_operand.vmem [shape: bf16[16,128], index: 4, kind: output, shape index: {}]  }
   0x1   :  { %v1861_v0 = vld [vmem:[%s2457_s1 + $0x78] sm:$0xff]   ;;  %v1865_v4 = vld [vmem:[%s2457_s1 + $0x70] sm:$0xff]   ;;  %v1869_v8 = vld [vmem:[%s2457_s1 + $0x68] sm:$0xff]  }
   0x2   :  { %v1862_v1 = vld [vmem:[%s2457_s1 + $0xf8] sm:$0xff]   ;;  %1685 = vmatprep.subr.bf16.mxu0 %v1861_v0  ;;  %v1866_v5 = vld [vmem:[%s2457_s1 + $0xf0] sm:$0xff]   ;;  %v1870_v9 = vld [vmem:[%s2457_s1 + $0xe8] sm:$0xff]  }
   0x3   :  { %v1863_v2 = vld [vmem:[%s2457_s1 + $0x38] sm:$0xff]   ;;  %1707 = vmatprep.subr.bf16.mxu1 %v1862_v1  ;;  %v1867_v6 = vld [vmem:[%s2457_s1 + $0x30] sm:$0xff]   ;;  %v1871_v10 = vld [vmem:[%s2457_s1 + $0x28] sm:$0xff]  }
   0x4   :  { %v1864_v3 = vld [vmem:[%s2457_s1 + $0xb8] sm:$0xff]   ;;  %1686 = vmatpush3.bf16.msra.mxu0 %v1863_v2  ;;  %v1868_v7 = vld [vmem:[%s2457_s1 + $0xb0] sm:$0xff]   ;;  %v1872_v11 = vld [vmem:[%s2457_s1 + $0xa8] sm:$0xff]  }
   0x5   :  { %1708 = vmatpush3.bf16.msra.mxu1 %v1864_v3  ;;  %1687 = vmatprep.subr.bf16.mxu0 %v1865_v4  ;;  %v1873_v12 = vld [vmem:[%s2457_s1 + $0x60] sm:$0xff]   ;;  %v1877_v16 = vld [vmem:[%s2457_s1 + $0x58] sm:$0xff]   ;;  %v1881_v20 = vld [vmem:[%s2457_s1 + $0x50] sm:$0xff]  }
   0x6   :  { %1709 = vmatprep.subr.bf16.mxu1 %v1866_v5  ;;  %v1874_v13 = vld [vmem:[%s2457_s1 + $0xe0] sm:$0xff]   ;;  %v1878_v17 = vld [vmem:[%s2457_s1 + $0xd8] sm:$0xff]   ;;  %v1882_v21 = vld [vmem:[%s2457_s1 + $0xd0] sm:$0xff]  }
   0x7   :  { %v1875_v14 = vld [vmem:[%s2457_s1 + $0x20] sm:$0xff]   ;;  %v1879_v18 = vld [vmem:[%s2457_s1 + $0x18] sm:$0xff]   ;;  %v1883_v22 = vld [vmem:[%s2457_s1 + $0x10] sm:$0xff]  }
   0x8   :  { %1688 = vmatpush3.bf16.msra.mxu0 %v1867_v6  ;;  %v1876_v15 = vld [vmem:[%s2457_s1 + $0xa0] sm:$0xff]   ;;  %v1880_v19 = vld [vmem:[%s2457_s1 + $0x98] sm:$0xff]   ;;  %v1884_v23 = vld [vmem:[%s2457_s1 + $0x90] sm:$0xff]  }
   0x9   :  { %1710 = vmatpush3.bf16.msra.mxu1 %v1868_v7  ;;  %1689 = vmatprep.subr.bf16.mxu0 %v1869_v8  ;;  %v1885_v24 = vld [vmem:[%s2457_s1 + $0x48] sm:$0xff]   ;;  %v1889_v28 = vld [vmem:[%s2457_s1 + $0x40] sm:$0xff]   ;;  %v1893_v40 = vld [vmem:[%s2457_s1 + $0x178] sm:$0xff]  }
   0xa   :  { %1711 = vmatprep.subr.bf16.mxu1 %v1870_v9  ;;  %v1886_v25 = vld [vmem:[%s2457_s1 + $0xc8] sm:$0xff]   ;;  %v1890_v29 = vld [vmem:[%s2457_s1 + $0xc0] sm:$0xff]   ;;  %v1894_v41 = vld [vmem:[%s2457_s1 + $0x1f8] sm:$0xff]  }
   0xb   :  { %v1887_v26 = vld [vmem:[%s2457_s1 + $0x8] sm:$0xff]   ;;  %v1891_v30 = vld [vmem:[%s2457_s1] sm:$0xff]   ;;  %v1895_v42 = vld [vmem:[%s2457_s1 + $0x138] sm:$0xff]  }
   0xc   :  { %1690 = vmatpush3.bf16.msra.mxu0 %v1871_v10  ;;  %v1888_v27 = vld [vmem:[%s2457_s1 + $0x88] sm:$0xff]   ;;  %v1892_v31 = vld [vmem:[%s2457_s1 + $0x80] sm:$0xff]   ;;  %v1896_v43 = vld [vmem:[%s2457_s1 + $0x1b8] sm:$0xff]  }
   0xd   :  { %1712 = vmatpush3.bf16.msra.mxu1 %v1872_v11  ;;  %1691 = vmatprep.subr.bf16.mxu0 %v1873_v12  ;;  %v18_v32 = vld [vmem:[%s2458_s0] sm:$0xff]  ;;  %v19_v34 = vld [vmem:[%s2458_s0 + $0x8] sm:$0xff]  ;;  %v1897_v44 = vld [vmem:[%s2457_s1 + $0x170] sm:$0xff]  }
   0xe   :  { %1713 = vmatprep.subr.bf16.mxu1 %v1874_v13  ;;  %v26_v33 = vld [vmem:[%s2458_s0 + $0x40] sm:$0xff]  ;;  %v27_v37 = vld [vmem:[%s2458_s0 + $0x48] sm:$0xff]  ;;  %v1898_v45 = vld [vmem:[%s2457_s1 + $0x1f0] sm:$0xff]  }
   0xf   :  { %v1532_v35 = vcombine.low %v18_v32, %v26_v33  ;;  %v1533_v36 = vcombine.high %v18_v32, %v26_v33  ;;  %v1534_v38 = vcombine.low %v19_v34, %v27_v37  ;;  %v1535_v39 = vcombine.high %v19_v34, %v27_v37  ;;  %v1899_v46 = vld [vmem:[%s2457_s1 + $0x130] sm:$0xff]   ;;  %v1901_v48 = vld [vmem:[%s2457_s1 + $0x168] sm:$0xff]   ;;  %v1905_v52 = vld [vmem:[%s2457_s1 + $0x160] sm:$0xff]  }
  0x10   :  { %1692 = vmatpush3.bf16.msra.mxu0 %v1875_v14  ;;  %v1900_v47 = vld [vmem:[%s2457_s1 + $0x1b0] sm:$0xff]   ;;  %v1902_v49 = vld [vmem:[%s2457_s1 + $0x1e8] sm:$0xff]   ;;  %v1906_v53 = vld [vmem:[%s2457_s1 + $0x1e0] sm:$0xff]  }
  0x11   :  { %1714 = vmatpush3.bf16.msra.mxu1 %v1876_v15  ;;  %1693 = vmatprep.subr.bf16.mxu0 %v1877_v16  ;;  %v1903_v50 = vld [vmem:[%s2457_s1 + $0x128] sm:$0xff]   ;;  %v1907_v54 = vld [vmem:[%s2457_s1 + $0x120] sm:$0xff]   ;;  %v1909_v56 = vld [vmem:[%s2457_s1 + $0x158] sm:$0xff]  }
  0x12   :  { %1715 = vmatprep.subr.bf16.mxu1 %v1878_v17  ;;  %1170 = vmatprep.mubr.bf16.mxu0 %v1533_v36  ;;  %v1904_v51 = vld [vmem:[%s2457_s1 + $0x1a8] sm:$0xff]   ;;  %v1908_v55 = vld [vmem:[%s2457_s1 + $0x1a0] sm:$0xff]   ;;  %v1910_v57 = vld [vmem:[%s2457_s1 + $0x1d8] sm:$0xff]  }
  0x13   :  { %1211 = vmatprep.mubr.bf16.mxu1 %v1535_v39  ;;  %v1911_v58 = vld [vmem:[%s2457_s1 + $0x118] sm:$0xff]   ;;  %v1913_v60 = vld [vmem:[%s2457_s1 + $0x150] sm:$0xff]   ;;  %v1917_v0 = vld [vmem:[%s2457_s1 + $0x148] sm:$0xff]  }
  0x14   :  { %1694 = vmatpush3.bf16.msra.mxu0 %v1879_v18  ;;  %v1912_v59 = vld [vmem:[%s2457_s1 + $0x198] sm:$0xff]   ;;  %v1914_v61 = vld [vmem:[%s2457_s1 + $0x1d0] sm:$0xff]   ;;  %v1918_v1 = vld [vmem:[%s2457_s1 + $0x1c8] sm:$0xff]  }
  0x15   :  { %1716 = vmatpush3.bf16.msra.mxu1 %v1880_v19  ;;  %1695 = vmatprep.subr.bf16.mxu0 %v1881_v20  ;;  %v1915_v62 = vld [vmem:[%s2457_s1 + $0x110] sm:$0xff]   ;;  %v1919_v2 = vld [vmem:[%s2457_s1 + $0x108] sm:$0xff]   ;;  %v1921_v4 = vld [vmem:[%s2457_s1 + $0x140] sm:$0xff]  }
  0x16   :  { %1717 = vmatprep.subr.bf16.mxu1 %v1882_v21  ;;  %v1916_v63 = vld [vmem:[%s2457_s1 + $0x190] sm:$0xff]   ;;  %v1920_v3 = vld [vmem:[%s2457_s1 + $0x188] sm:$0xff]   ;;  %v1922_v5 = vld [vmem:[%s2457_s1 + $0x1c0] sm:$0xff]  }
  0x17   :  { %v1923_v6 = vld [vmem:[%s2457_s1 + $0x100] sm:$0xff]   ;;  %v20_v8 = vld [vmem:[%s2458_s0 + $0x10] sm:$0xff]  ;;  %v21_v12 = vld [vmem:[%s2458_s0 + $0x18] sm:$0xff] }
  0x18   :  { %1696 = vmatpush3.bf16.msra.mxu0 %v1883_v22  ;;  %v1924_v7 = vld [vmem:[%s2457_s1 + $0x180] sm:$0xff]   ;;  %v28_v9 = vld [vmem:[%s2458_s0 + $0x50] sm:$0xff]  ;;  %v29_v13 = vld [vmem:[%s2458_s0 + $0x58] sm:$0xff] }
  0x19   :  { %1718 = vmatpush3.bf16.msra.mxu1 %v1884_v23  ;;  %1697 = vmatprep.subr.bf16.mxu0 %v1885_v24  ;;  %v1536_v10 = vcombine.low %v20_v8, %v28_v9  ;;  %v1537_v11 = vcombine.high %v20_v8, %v28_v9  ;;  %v1538_v14 = vcombine.low %v21_v12, %v29_v13  ;;  %v1925_v16 = vld [vmem:[%s2457_s1 + $0x278] sm:$0xff]   ;;  %v1929_v20 = vld [vmem:[%s2457_s1 + $0x270] sm:$0xff]   ;;  %v1933_v24 = vld [vmem:[%s2457_s1 + $0x268] sm:$0xff]  }
  0x1a   :  { %1719 = vmatprep.subr.bf16.mxu1 %v1886_v25  ;;  %v1539_v15 = vcombine.high %v21_v12, %v29_v13  ;;  %v1926_v17 = vld [vmem:[%s2457_s1 + $0x2f8] sm:$0xff]   ;;  %v1930_v21 = vld [vmem:[%s2457_s1 + $0x2f0] sm:$0xff]   ;;  %v1934_v25 = vld [vmem:[%s2457_s1 + $0x2e8] sm:$0xff]  }
  0x1b   :  { %v1927_v18 = vld [vmem:[%s2457_s1 + $0x238] sm:$0xff]   ;;  %v1931_v22 = vld [vmem:[%s2457_s1 + $0x230] sm:$0xff]  }
  0x1c   :  { %1698 = vmatpush3.bf16.msra.mxu0 %v1887_v26  ;;  %v1928_v19 = vld [vmem:[%s2457_s1 + $0x2b8] sm:$0xff]   ;;  %v1932_v23 = vld [vmem:[%s2457_s1 + $0x2b0] sm:$0xff]   ;;  %v1935_v26 = vld [vmem:[%s2457_s1 + $0x228] sm:$0xff]  }
  0x1d   :  { %1720 = vmatpush3.bf16.msra.mxu1 %v1888_v27  ;;  %1699 = vmatprep.subr.bf16.mxu0 %v1889_v28  ;;  %v1936_v27 = vld [vmem:[%s2457_s1 + $0x2a8] sm:$0xff]   ;;  %v1937_v28 = vld [vmem:[%s2457_s1 + $0x260] sm:$0xff]   ;;  %v1941_v32 = vld [vmem:[%s2457_s1 + $0x258] sm:$0xff]  }
  0x1e   :  { %1721 = vmatprep.subr.bf16.mxu1 %v1890_v29  ;;  %v1938_v29 = vld [vmem:[%s2457_s1 + $0x2e0] sm:$0xff]   ;;  %v1942_v33 = vld [vmem:[%s2457_s1 + $0x2d8] sm:$0xff]   ;;  %v1945_v36 = vld [vmem:[%s2457_s1 + $0x250] sm:$0xff]  }
  0x1f   :  { %v1943_v34 = vld [vmem:[%s2457_s1 + $0x218] sm:$0xff]   ;;  %v1946_v37 = vld [vmem:[%s2457_s1 + $0x2d0] sm:$0xff]  }
  0x20   :  { %1700 = vmatpush3.bf16.msra.mxu0 %v1891_v30  ;;  %v1939_v30 = vld [vmem:[%s2457_s1 + $0x220] sm:$0xff]   ;;  %v1948_v39 = vld [vmem:[%s2457_s1 + $0x290] sm:$0xff]   ;;  %v1973_v8 = vld [vmem:[%s2457_s1 + $0x358] sm:$0xff]  }
  0x21   :  { %1722 = vmatpush3.bf16.msra.mxu1 %v1892_v31  ;;  %1729 = vmatprep.subr.bf16.mxu0 %v1893_v40  ;;  %v1940_v31 = vld [vmem:[%s2457_s1 + $0x2a0] sm:$0xff]   ;;  %v1949_v40 = vld [vmem:[%s2457_s1 + $0x248] sm:$0xff]   ;;  %v1974_v9 = vld [vmem:[%s2457_s1 + $0x3d8] sm:$0xff]  }
  0x22   :  { %1751 = vmatprep.subr.bf16.mxu1 %v1894_v41  ;;  %v1950_v41 = vld [vmem:[%s2457_s1 + $0x2c8] sm:$0xff]   ;;  %v1977_v12 = vld [vmem:[%s2457_s1 + $0x350] sm:$0xff]  }
  0x23   :  { %1171 = vmatmul.mubr.bf16.vlgmr.msra.gmra.mxu0 %v1532_v35  ;;  %v1944_v35 = vld [vmem:[%s2457_s1 + $0x298] sm:$0xff]   ;;  %v1978_v13 = vld [vmem:[%s2457_s1 + $0x3d0] sm:$0xff]  }
  0x24   :  { %1212 = vmatmul.mubr.bf16.vlgmr.msra.gmra.mxu1 %v1534_v38  ;;  %1730 = vmatpush3.bf16.msra.mxu0 %v1895_v42  ;;  %v1947_v38 = vld [vmem:[%s2457_s1 + $0x210] sm:$0xff]   ;;  %v1951_v42 = vld [vmem:[%s2457_s1 + $0x208] sm:$0xff]  }
  0x25   :  { %1752 = vmatpush3.bf16.msra.mxu1 %v1896_v43  ;;  %1731 = vmatprep.subr.bf16.mxu0 %v1897_v44  ;;  %v1952_v43 = vld [vmem:[%s2457_s1 + $0x288] sm:$0xff]   ;;  %v1953_v44 = vld [vmem:[%s2457_s1 + $0x240] sm:$0xff]  }
  0x26   :  { %1753 = vmatprep.subr.bf16.mxu1 %v1898_v45  ;;  %1252 = vmatprep.mubr.bf16.mxu0 %v1537_v11  ;;  %v1954_v45 = vld [vmem:[%s2457_s1 + $0x2c0] sm:$0xff]   ;;  %v1976_v11 = vld [vmem:[%s2457_s1 + $0x398] sm:$0xff]  }
  0x27   :  { %1293 = vmatprep.mubr.bf16.mxu1 %v1539_v15  ;;  %v1980_v15 = vld [vmem:[%s2457_s1 + $0x390] sm:$0xff]  }
  0x28   :  { %1732 = vmatpush3.bf16.msra.mxu0 %v1899_v46  ;;  %v1955_v46 = vld [vmem:[%s2457_s1 + $0x200] sm:$0xff]  }
  0x29   :  { %1754 = vmatpush3.bf16.msra.mxu1 %v1900_v47  ;;  %1733 = vmatprep.subr.bf16.mxu0 %v1901_v48  ;;  %v1956_v47 = vld [vmem:[%s2457_s1 + $0x280] sm:$0xff]  }
  0x2a   :  { %1755 = vmatprep.subr.bf16.mxu1 %v1902_v49  ;;  %v22_v48 = vld [vmem:[%s2458_s0 + $0x20] sm:$0xff] }
  0x2b   :  { %v30_v49 = vld [vmem:[%s2458_s0 + $0x60] sm:$0xff] }
  0x2c   :  { %1734 = vmatpush3.bf16.msra.mxu0 %v1903_v50  ;;  %v23_v50 = vld [vmem:[%s2458_s0 + $0x28] sm:$0xff] }
  0x2d   :  { %1756 = vmatpush3.bf16.msra.mxu1 %v1904_v51  ;;  %1735 = vmatprep.subr.bf16.mxu0 %v1905_v52  ;;  %v31_v51 = vld [vmem:[%s2458_s0 + $0x68] sm:$0xff]  ;;  %v1540_v52 = vcombine.low %v22_v48, %v30_v49 }
  0x2e   :  { %1757 = vmatprep.subr.bf16.mxu1 %v1906_v53  ;;  %v1541_v53 = vcombine.high %v22_v48, %v30_v49 }
  0x30   :  { %1736 = vmatpush3.bf16.msra.mxu0 %v1907_v54  ;;  %v1542_v54 = vcombine.low %v23_v50, %v31_v51 }
  0x31   :  { %1758 = vmatpush3.bf16.msra.mxu1 %v1908_v55  ;;  %1737 = vmatprep.subr.bf16.mxu0 %v1909_v56  ;;  %v1543_v55 = vcombine.high %v23_v50, %v31_v51  ;;  %v1957_v56 = vld [vmem:[%s2457_s1 + $0x378] sm:$0xff]  }
  0x32   :  { %1759 = vmatprep.subr.bf16.mxu1 %v1910_v57  ;;  %v1958_v57 = vld [vmem:[%s2457_s1 + $0x3f8] sm:$0xff]  }
  0x34   :  { %1738 = vmatpush3.bf16.msra.mxu0 %v1911_v58  ;;  %v1959_v58 = vld [vmem:[%s2457_s1 + $0x338] sm:$0xff]  }
  0x35   :  { %1760 = vmatpush3.bf16.msra.mxu1 %v1912_v59  ;;  %1739 = vmatprep.subr.bf16.mxu0 %v1913_v60  ;;  %v1960_v59 = vld [vmem:[%s2457_s1 + $0x3b8] sm:$0xff]   ;;  %v1961_v60 = vld [vmem:[%s2457_s1 + $0x370] sm:$0xff]  }
  0x36   :  { %1761 = vmatprep.subr.bf16.mxu1 %v1914_v61  ;;  %v1962_v61 = vld [vmem:[%s2457_s1 + $0x3f0] sm:$0xff]  }
  0x38   :  { %1740 = vmatpush3.bf16.msra.mxu0 %v1915_v62  ;;  %v1963_v62 = vld [vmem:[%s2457_s1 + $0x330] sm:$0xff]  }
  0x39   :  { %1762 = vmatpush3.bf16.msra.mxu1 %v1916_v63  ;;  %1741 = vmatprep.subr.bf16.mxu0 %v1917_v0  ;;  %v1964_v63 = vld [vmem:[%s2457_s1 + $0x3b0] sm:$0xff]   ;;  %v1965_v0 = vld [vmem:[%s2457_s1 + $0x368] sm:$0xff]  }
  0x3a   :  { %1763 = vmatprep.subr.bf16.mxu1 %v1918_v1  ;;  %v1966_v1 = vld [vmem:[%s2457_s1 + $0x3e8] sm:$0xff]  }
  0x3c   :  { %1742 = vmatpush3.bf16.msra.mxu0 %v1919_v2  ;;  %v1967_v2 = vld [vmem:[%s2457_s1 + $0x328] sm:$0xff]  }
  0x3d   :  { %1764 = vmatpush3.bf16.msra.mxu1 %v1920_v3  ;;  %1743 = vmatprep.subr.bf16.mxu0 %v1921_v4  ;;  %v1968_v3 = vld [vmem:[%s2457_s1 + $0x3a8] sm:$0xff]   ;;  %v1969_v4 = vld [vmem:[%s2457_s1 + $0x360] sm:$0xff]  }
  0x3e   :  { %1765 = vmatprep.subr.bf16.mxu1 %v1922_v5  ;;  %v1970_v5 = vld [vmem:[%s2457_s1 + $0x3e0] sm:$0xff]  }
  0x40   :  { %1744 = vmatpush3.bf16.msra.mxu0 %v1923_v6  ;;  %v1971_v6 = vld [vmem:[%s2457_s1 + $0x320] sm:$0xff]  }
  0x41   :  { %1766 = vmatpush3.bf16.msra.mxu1 %v1924_v7  ;;  %1773 = vmatprep.subr.bf16.mxu0 %v1925_v16  ;;  %v1972_v7 = vld [vmem:[%s2457_s1 + $0x3a0] sm:$0xff]   ;;  %v1981_v16 = vld [vmem:[%s2457_s1 + $0x348] sm:$0xff]  }
  0x42   :  { %1795 = vmatprep.subr.bf16.mxu1 %v1926_v17  ;;  %v1982_v17 = vld [vmem:[%s2457_s1 + $0x3c8] sm:$0xff]  }
  0x43   :  { %1253 = vmatmul.mubr.bf16.vlgmr.msra.gmra.mxu0 %v1536_v10  ;;  %v1975_v10 = vld [vmem:[%s2457_s1 + $0x318] sm:$0xff]  }
  0x44   :  { %1294 = vmatmul.mubr.bf16.vlgmr.msra.gmra.mxu1 %v1538_v14  ;;  %1774 = vmatpush3.bf16.msra.mxu0 %v1927_v18  ;;  %v1979_v14 = vld [vmem:[%s2457_s1 + $0x310] sm:$0xff]   ;;  %v1983_v18 = vld [vmem:[%s2457_s1 + $0x308] sm:$0xff]  }
  0x45   :  { %1796 = vmatpush3.bf16.msra.mxu1 %v1928_v19  ;;  %1775 = vmatprep.subr.bf16.mxu0 %v1929_v20  ;;  %v1984_v19 = vld [vmem:[%s2457_s1 + $0x388] sm:$0xff]   ;;  %v1985_v20 = vld [vmem:[%s2457_s1 + $0x340] sm:$0xff]  }
  0x46   :  { %1797 = vmatprep.subr.bf16.mxu1 %v1930_v21  ;;  %1334 = vmatprep.mubr.bf16.mxu0 %v1541_v53  ;;  %v1986_v21 = vld [vmem:[%s2457_s1 + $0x3c0] sm:$0xff]  }
  0x47   :  { %1375 = vmatprep.mubr.bf16.mxu1 %v1543_v55 }
  0x48   :  { %1776 = vmatpush3.bf16.msra.mxu0 %v1931_v22  ;;  %v1987_v22 = vld [vmem:[%s2457_s1 + $0x300] sm:$0xff]  }
  0x49   :  { %1798 = vmatpush3.bf16.msra.mxu1 %v1932_v23  ;;  %1777 = vmatprep.subr.bf16.mxu0 %v1933_v24  ;;  %v1988_v23 = vld [vmem:[%s2457_s1 + $0x380] sm:$0xff]   ;;  %v24_v24 = vld [vmem:[%s2458_s0 + $0x30] sm:$0xff] }
  0x4a   :  { %1799 = vmatprep.subr.bf16.mxu1 %v1934_v25  ;;  %v32_v25 = vld [vmem:[%s2458_s0 + $0x70] sm:$0xff] }
  0x4c   :  { %1778 = vmatpush3.bf16.msra.mxu0 %v1935_v26  ;;  %v25_v26 = vld [vmem:[%s2458_s0 + $0x38] sm:$0xff] }
  0x4d   :  { %1800 = vmatpush3.bf16.msra.mxu1 %v1936_v27  ;;  %1779 = vmatprep.subr.bf16.mxu0 %v1937_v28  ;;  %v1544_v27 = vcombine.low %v24_v24, %v32_v25  ;;  %v1545_v28 = vcombine.high %v24_v24, %v32_v25 }
  0x4e   :  { %1801 = vmatprep.subr.bf16.mxu1 %v1938_v29  ;;  %v33_v29 = vld [vmem:[%s2458_s0 + $0x78] sm:$0xff] }
  0x50   :  { %1780 = vmatpush3.bf16.msra.mxu0 %v1939_v30  ;;  %v1546_v30 = vcombine.low %v25_v26, %v33_v29 }
  0x51   :  { %1802 = vmatpush3.bf16.msra.mxu1 %v1940_v31  ;;  %1781 = vmatprep.subr.bf16.mxu0 %v1941_v32  ;;  %v1547_v31 = vcombine.high %v25_v26, %v33_v29 }
  0x52   :  { %1803 = vmatprep.subr.bf16.mxu1 %v1942_v33 }
  0x54   :  { %1782 = vmatpush3.bf16.msra.mxu0 %v1943_v34 }
  0x55   :  { %1804 = vmatpush3.bf16.msra.mxu1 %v1944_v35  ;;  %1783 = vmatprep.subr.bf16.mxu0 %v1945_v36 }
  0x56   :  { %1805 = vmatprep.subr.bf16.mxu1 %v1946_v37 }
  0x58   :  { %1784 = vmatpush3.bf16.msra.mxu0 %v1947_v38 }
  0x59   :  { %1806 = vmatpush3.bf16.msra.mxu1 %v1948_v39  ;;  %1785 = vmatprep.subr.bf16.mxu0 %v1949_v40 }
  0x5a   :  { %1807 = vmatprep.subr.bf16.mxu1 %v1950_v41 }
  0x5c   :  { %1786 = vmatpush3.bf16.msra.mxu0 %v1951_v42 }
  0x5d   :  { %1808 = vmatpush3.bf16.msra.mxu1 %v1952_v43  ;;  %1787 = vmatprep.subr.bf16.mxu0 %v1953_v44 }
  0x5e   :  { %1809 = vmatprep.subr.bf16.mxu1 %v1954_v45 }
  0x60   :  { %1788 = vmatpush3.bf16.msra.mxu0 %v1955_v46 }
  0x61   :  { %1810 = vmatpush3.bf16.msra.mxu1 %v1956_v47  ;;  %1817 = vmatprep.subr.bf16.mxu0 %v1957_v56 }
  0x62   :  { %1839 = vmatprep.subr.bf16.mxu1 %v1958_v57 }
  0x63   :  { %1335 = vmatmul.mubr.bf16.vlgmr.msra.gmra.mxu0 %v1540_v52 }
  0x64   :  { %1376 = vmatmul.mubr.bf16.vlgmr.msra.gmra.mxu1 %v1542_v54  ;;  %1818 = vmatpush3.bf16.msra.mxu0 %v1959_v58 }
  0x65   :  { %1840 = vmatpush3.bf16.msra.mxu1 %v1960_v59  ;;  %1819 = vmatprep.subr.bf16.mxu0 %v1961_v60 }
  0x66   :  { %1841 = vmatprep.subr.bf16.mxu1 %v1962_v61  ;;  %1416 = vmatprep.mubr.bf16.mxu0 %v1545_v28 }
  0x67   :  { %1457 = vmatprep.mubr.bf16.mxu1 %v1547_v31 }
  0x68   :  { %1820 = vmatpush3.bf16.msra.mxu0 %v1963_v62 }
  0x69   :  { %1842 = vmatpush3.bf16.msra.mxu1 %v1964_v63  ;;  %1821 = vmatprep.subr.bf16.mxu0 %v1965_v0 }
  0x6a   :  { %1843 = vmatprep.subr.bf16.mxu1 %v1966_v1 }
  0x6c   :  { %1822 = vmatpush3.bf16.msra.mxu0 %v1967_v2 }
  0x6d   :  { %1844 = vmatpush3.bf16.msra.mxu1 %v1968_v3  ;;  %1823 = vmatprep.subr.bf16.mxu0 %v1969_v4 }
  0x6e   :  { %1845 = vmatprep.subr.bf16.mxu1 %v1970_v5 }
  0x70   :  { %1824 = vmatpush3.bf16.msra.mxu0 %v1971_v6 }
  0x71   :  { %1846 = vmatpush3.bf16.msra.mxu1 %v1972_v7  ;;  %1825 = vmatprep.subr.bf16.mxu0 %v1973_v8 }
  0x72   :  { %1847 = vmatprep.subr.bf16.mxu1 %v1974_v9 }
  0x74   :  { %1826 = vmatpush3.bf16.msra.mxu0 %v1975_v10 }
  0x75   :  { %1848 = vmatpush3.bf16.msra.mxu1 %v1976_v11  ;;  %1827 = vmatprep.subr.bf16.mxu0 %v1977_v12 }
  0x76   :  { %1849 = vmatprep.subr.bf16.mxu1 %v1978_v13 }
  0x78   :  { %1828 = vmatpush3.bf16.msra.mxu0 %v1979_v14 }
  0x79   :  { %1850 = vmatpush3.bf16.msra.mxu1 %v1980_v15  ;;  %1829 = vmatprep.subr.bf16.mxu0 %v1981_v16 }
  0x7a   :  { %1851 = vmatprep.subr.bf16.mxu1 %v1982_v17 }
  0x7c   :  { %1830 = vmatpush3.bf16.msra.mxu0 %v1983_v18 }
  0x7d   :  { %1852 = vmatpush3.bf16.msra.mxu1 %v1984_v19  ;;  %1831 = vmatprep.subr.bf16.mxu0 %v1985_v20 }
  0x7e   :  { %1853 = vmatprep.subr.bf16.mxu1 %v1986_v21 }
  0x80   :  { %1832 = vmatpush3.bf16.msra.mxu0 %v1987_v22 }
  0x81   :  { %1854 = vmatpush3.bf16.msra.mxu1 %v1988_v23 }
  0x83   :  { %1417 = vmatmul.mubr.bf16.vlgmr.msra.gmra.mxu0 %v1544_v27 }
  0x84   :  { %1458 = vmatmul.mubr.bf16.vlgmr.msra.gmra.mxu1 %v1546_v30 }
  0xe3   :  { %v1701_v32 = vpop.f32.mrf.mxu0 }
  0xe4   :  { %v1723_v33 = vpop.f32.mrf.mxu1 }
  0xe5   :  { %v1702_v34 = vpop.f32.mrf.mxu0 }
  0xe6   :  { %v1724_v35 = vpop.f32.mrf.mxu1  ;;  %v1703_v51 = vadd.f32 %v1702_v34, %v1701_v32 }
  0xe7   :  { %v1704_v36 = vpop.f32.mrf.mxu0  ;;  %v1725_v52 = vadd.f32 %v1724_v35, %v1723_v33 }
  0xe8   :  { %v1726_v37 = vpop.f32.mrf.mxu1 }
  0xe9   :  { %v1705_v38 = vpop.f32.mrf.mxu0  ;;  %v1214_v58 = vadd.f32 %v1725_v52, %v1703_v51 }
  0xea   :  { %v1727_v40 = vpop.f32.mrf.mxu1  ;;  %v1706_v53 = vadd.f32 %v1705_v38, %v1704_v36 }
  0xeb   :  { %v1728_v54 = vadd.f32 %v1727_v40, %v1726_v37 }
  0xed   :  { %v1217_v60 = vadd.f32 %v1728_v54, %v1706_v53  ;;  %v1497_v54 = vld [vmem:[%s2460_s3] sm:$0x1] }
 0x103   :  { %v1745_v39 = vpop.f32.mrf.mxu0 }
 0x104   :  { %v1767_v41 = vpop.f32.mrf.mxu1 }
 0x105   :  { %v1746_v42 = vpop.f32.mrf.mxu0 }
 0x106   :  { %v1768_v43 = vpop.f32.mrf.mxu1  ;;  %v1747_v55 = vadd.f32 %v1746_v42, %v1745_v39 }
 0x107   :  { %v1748_v44 = vpop.f32.mrf.mxu0  ;;  %v1769_v62 = vadd.f32 %v1768_v43, %v1767_v41 }
 0x108   :  { %v1770_v45 = vpop.f32.mrf.mxu1  ;;  %v1255_v61 = vadd.f32 %v1747_v55, %v1214_v58 }
 0x109   :  { %v1749_v46 = vpop.f32.mrf.mxu0 }
 0x10a   :  { %v1771_v48 = vpop.f32.mrf.mxu1  ;;  %v1750_v59 = vadd.f32 %v1749_v46, %v1748_v44  ;;  %v1296_v3 = vadd.f32 %v1769_v62, %v1255_v61 }
 0x10b   :  { %v1772_v4 = vadd.f32 %v1771_v48, %v1770_v45  ;;  %v1501_v48 = vlaneseq }
 0x10c   :  { %v1258_v1 = vadd.f32 %v1750_v59, %v1217_v60 }
 0x10e   :  { %v1299_v8 = vadd.f32 %v1772_v4, %v1258_v1 }
 0x123   :  { %v1789_v47 = vpop.f32.mrf.mxu0 }
 0x124   :  { %v1811_v49 = vpop.f32.mrf.mxu1 }
 0x125   :  { %v1790_v50 = vpop.f32.mrf.mxu0 }
 0x126   :  { %v1812_v56 = vpop.f32.mrf.mxu1  ;;  %v1791_v2 = vadd.f32 %v1790_v50, %v1789_v47  ;;  %v1495_v50 = vld [vmem:[%s2459_s2] sm:$0x1] }
 0x127   :  { %v1792_v57 = vpop.f32.mrf.mxu0  ;;  %v1813_v10 = vadd.f32 %v1812_v56, %v1811_v49  ;;  %v1502_v49 = vshrl.u32 %v1501_v48, 7 }
 0x128   :  { %v1814_v63 = vpop.f32.mrf.mxu1  ;;  %v1337_v9 = vadd.f32 %v1791_v2, %v1296_v3 }
 0x129   :  { %v1793_v0 = vpop.f32.mrf.mxu0  ;;  %v1503_v51 = vsub.s32 0, %v1502_v49 }
 0x12a   :  { %v1794_v5 = vadd.f32 %v1793_v0, %v1792_v57  ;;  %v1815_v6 = vpop.f32.mrf.mxu1  ;;  %v1378_v17 = vadd.f32 %v1813_v10, %v1337_v9 }
 0x12b   :  { %v1816_v18 = vadd.f32 %v1815_v6, %v1814_v63 }
 0x12c   :  { %v1340_v13 = vadd.f32 %v1794_v5, %v1299_v8 }
 0x12e   :  { %v1381_v21 = vadd.f32 %v1816_v18, %v1340_v13 }
 0x143   :  { %v1833_v7 = vpop.f32.mrf.mxu0 }
 0x144   :  { %v1855_v11 = vpop.f32.mrf.mxu1 }
 0x145   :  { %v1834_v12 = vpop.f32.mrf.mxu0 }
 0x146   :  { %v1835_v14 = vadd.f32 %v1834_v12, %v1833_v7  ;;  %v1856_v15 = vpop.f32.mrf.mxu1 }
 0x147   :  { %v1836_v16 = vpop.f32.mrf.mxu0  ;;  %v1857_v25 = vadd.f32 %v1856_v15, %v1855_v11 }
 0x148   :  { %v1858_v19 = vpop.f32.mrf.mxu1  ;;  %v1419_v22 = vadd.f32 %v1835_v14, %v1378_v17 }
 0x149   :  { %v1837_v20 = vpop.f32.mrf.mxu0 }
 0x14a   :  { %v1838_v23 = vadd.f32 %v1837_v20, %v1836_v16  ;;  %v1859_v24 = vpop.f32.mrf.mxu1  ;;  %v1460_v28 = vadd.f32 %v1857_v25, %v1419_v22 }
 0x14b   :  { %v1860_v27 = vadd.f32 %v1859_v24, %v1858_v19 }
 0x14c   :  { %v1422_v26 = vadd.f32 %v1838_v23, %v1381_v21 }
 0x14e   :  { %v1463_v29 = vadd.f32 %v1860_v27, %v1422_v26 }
 0x150   :  { %v1466_v30 = vadd.f32 %v1463_v29, %v1460_v28 }
 0x152   :  { %v1467_v31 = vrot.slane %v1466_v30, 4 }
 0x154   :  { %v1468_v32 = vadd.f32 %v1467_v31, %v1466_v30 }
 0x156   :  { %v1469_v33 = vrot.slane %v1468_v32, 2 }
 0x158   :  { %v1470_v34 = vadd.f32 %v1469_v33, %v1468_v32 }
 0x15a   :  { %v1471_v35 = vrot.slane %v1470_v34, 1 }
 0x15c   :  { %v1472_v36 = vadd.f32 %v1471_v35, %v1470_v34 }
 0x15e   :  { %v1473_v37 = vmul.f32 0.125, %v1472_v36 }
 0x160   :  { %v1479_v38 = vsub.f32 %v1460_v28, %v1473_v37 }
 0x162   :  { %v1483_v39 = vmul.f32 %v1479_v38, %v1479_v38 }
 0x164   :  { %v1486_v40 = vrot.slane %v1483_v39, 4 }
 0x166   :  { %v1487_v41 = vadd.f32 %v1486_v40, %v1483_v39 }
 0x168   :  { %v1488_v42 = vrot.slane %v1487_v41, 2 }
 0x16a   :  { %v1489_v43 = vadd.f32 %v1488_v42, %v1487_v41 }
 0x16c   :  { %v1490_v44 = vrot.slane %v1489_v43, 1 }
 0x16e   :  { %v1491_v45 = vadd.f32 %v1490_v44, %v1489_v43 }
 0x170   :  { %v1492_v46 = vmul.f32 0.125, %v1491_v45 }
 0x172   :  { %v1493_v47 = vadd.f32 1e-05, %v1492_v46 }
 0x174   :  { %1989 = vrsqrt.f32 %v1493_v47 }
 0x181   :  { %v1990_v52 = vpop.eup %1989 }
 0x182   :  { %v1496_v53 = vmul.f32 %v1990_v52, %v1495_v50 }
 0x184   :  { %v1498_v55 = vmul.f32 %v1496_v53, %v1473_v37  ;;  %v1504_v56 = vrot.slane %v1496_v53, %v1503_v51 }
 0x186   :  { %v1499_v57 = vsub.f32 %v1497_v54, %v1498_v55  ;;  %v1506_v58 = vmul.f32 %v1504_v56, %v1460_v28  ;;  %v1507_v59 = vmul.f32 %v1504_v56, %v1463_v29 }
 0x188   :  { %v1512_v60 = vrot.slane %v1499_v57, %v1503_v51 }
 0x18a   :  { %v1514_v61 = vadd.f32 %v1512_v60, %v1506_v58  ;;  %v1515_v62 = vadd.f32 %v1512_v60, %v1507_v59 }
 0x18c   :  { %v1516_v63 = vmax.f32 %v1514_v61, 0.0  ;;  %v1517_v0 = vmax.f32 %v1515_v62, 0.0 }
 0x18e   :  { %v1683_v1 = vpack.c.bf16 %v1517_v0, %v1516_v63 }
 0x190   :  { %1684 = vst [vmem:[%s2461_s4] sm:$0xff] %v1683_v1  }

</bundles_post_ra>
